<compile_context>
chip_gen: v6e
topology: v6e:2x2x1
jax: 0.10.0
libtpu: 0.0.40
codegen_flags: <defaults>
</compile_context>

<pallas_src>
import math
from functools import partial

import jax
import jax.numpy as jnp
from jax import lax
from jax.experimental import pallas as pl
from jax.experimental.pallas import tpu as pltpu


def _gelu_exact(x):
    # PyTorch nn.GELU default = exact erf formulation.
    return 0.5 * x * (1.0 + lax.erf(x * (1.0 / math.sqrt(2.0))))


def _gelu_approx(x):
    # Cheap sigmoid approximation (EUP-friendly); opt-in only.
    return x * jax.nn.sigmoid(1.702 * x)


def _round_up(x, m):
    return (x + m - 1) // m * m


def _choose_tm(n_rows, tm_max):
    """Row tile: multiple of 8; prefer >=2 row tiles so both v7x cores work."""
    n8 = _round_up(max(n_rows, 1), 8)
    tm = min(tm_max, n8)
    if n8 > 128 and _round_up(n8, tm) // tm < 2:
        tm = max(128, min(tm, _round_up(pl.cdiv(n8, 2), 8)))
    return tm


def _choose_tk(hidden, max_tk):
    """Hidden tile: multiple of 128, <= max_tk; hidden gets padded to it."""
    max_tk = max(128, (max_tk // 128) * 128)
    return min(max_tk, _round_up(hidden, 128))


def _vmem_budget_bytes(tm, tk, in_f, out_f, x_bytes, w_bytes, out_bytes):
    """Approximate VMEM footprint: double-buffered pipelined blocks + scratch."""
    dbl = 2
    pipelined = dbl * (tm * in_f * x_bytes       # x tile
                       + in_f * tk * w_bytes     # w1 hidden-slice
                       + tk * 4                  # b1 slice (f32)
                       + tk * out_f * w_bytes    # w2 hidden-slice
                       + out_f * 4               # b2 (f32)
                       + tm * out_f * out_bytes)  # output tile
    scratch = tm * out_f * 4                     # f32 accumulator
    return pipelined + scratch


def mlp_kernel(x_ref, w1_ref, b1_ref, w2_ref, b2_ref, o_ref, acc_ref,
               *, approx_gelu=False):
    # x_ref:  (tm, in_features)        input row tile
    # w1_ref: (in_features, tk)        fc1 weight, hidden slice k
    # b1_ref: (1, tk)                  fc1 bias,   hidden slice k (f32)
    # w2_ref: (tk, out_features)       fc2 weight, hidden slice k
    # b2_ref: (1, out_features)        fc2 bias (f32)
    # o_ref:  (tm, out_features)       output row tile (written on last k)
    # acc_ref:(tm, out_features) f32   accumulator over the hidden axis
    k = pl.program_id(1)

    @pl.when(k == 0)
    def _init():
        # Fold the fc2 bias into the accumulator init.
        acc_ref[...] = jnp.broadcast_to(b2_ref[...].astype(jnp.float32),
                                        acc_ref.shape)

    h = jnp.dot(x_ref[...], w1_ref[...], preferred_element_type=jnp.float32)
    h = h + b1_ref[...].astype(jnp.float32)
    h = _gelu_approx(h) if approx_gelu else _gelu_exact(h)
    # Dropout(p=0.0) is the identity -> nothing to do.
    acc_ref[...] += jnp.dot(h.astype(w2_ref.dtype), w2_ref[...],
                            preferred_element_type=jnp.float32)

    @pl.when(k == pl.num_programs(1) - 1)
    def _store():
        o_ref[...] = acc_ref[...].astype(o_ref.dtype)


def mlp_forward(x, w1, b1, w2, b2, *, tm=512, max_tk=512,
                compute_dtype=jnp.bfloat16, approx_gelu=False,
                vmem_limit_bytes=None):
    """x: (..., in_features). Returns (..., out_features).

    tm:            max row tile (tokens per MXU tile).
    max_tk:        max hidden-dim slice held resident per grid step
                   (512 is safe on v5e/v7x; 1024 is fine on v6e).
    compute_dtype: MXU operand dtype (default bf16, f32 accumulate).
                   Pass None or jnp.float32 for full-precision operands.
    approx_gelu:   use x*sigmoid(1.702x) instead of exact erf GELU.
    """
    orig_shape = x.shape
    orig_dtype = x.dtype
    in_features = orig_shape[-1]
    hidden = w1.shape[1]
    out_features = w2.shape[1]
    assert w1.shape == (in_features, hidden)
    assert w2.shape == (hidden, out_features)

    x2d = x.reshape(-1, in_features)
    N = x2d.shape[0]

    # --- row tiling (pad N up to a multiple of tm, crop afterwards) ---------
    tm = _choose_tm(N, tm)
    N_pad = _round_up(N, tm)
    if N_pad != N:
        x2d = jnp.pad(x2d, ((0, N_pad - N), (0, 0)))

    # --- hidden tiling (always tiled; pad hidden with zeros -> exact no-op) -
    tk = _choose_tk(hidden, max_tk)
    hidden_pad = _round_up(hidden, tk)
    if hidden_pad != hidden:
        w1 = jnp.pad(w1, ((0, 0), (0, hidden_pad - hidden)))
        b1 = jnp.pad(b1, (0, hidden_pad - hidden))
        w2 = jnp.pad(w2, ((0, hidden_pad - hidden), (0, 0)))
    nk = hidden_pad // tk

    # --- mixed precision: bf16 operands, f32 accumulation -------------------
    if compute_dtype is not None:
        x2d = x2d.astype(compute_dtype)
        w1 = w1.astype(compute_dtype)
        w2 = w2.astype(compute_dtype)

    # Biases stay f32 (added to the f32 accumulator / pre-GELU activations).
    b1_2d = b1.reshape(1, hidden_pad).astype(jnp.float32)
    b2_2d = b2.reshape(1, out_features).astype(jnp.float32)

    grid = (N_pad // tm, nk)
    n_row_tiles = grid[0]

    # --- explicit VMEM budget ------------------------------------------------
    if vmem_limit_bytes is None:
        budget = _vmem_budget_bytes(
            tm, tk, in_features, out_features,
            x2d.dtype.itemsize, w1.dtype.itemsize, orig_dtype.itemsize)
        vmem_limit_bytes = int(min(128 << 20,
                                   max(32 << 20, budget + (8 << 20))))

    # --- cost estimate (weights are re-read once per row tile when nk > 1) --
    flops = 2 * N_pad * hidden_pad * (in_features + out_features)
    weight_reads = n_row_tiles if nk > 1 else 1
    bytes_accessed = (
        x2d.size * x2d.dtype.itemsize
        + weight_reads * (w1.size * w1.dtype.itemsize
                          + w2.size * w2.dtype.itemsize)
        + b1_2d.size * 4 + b2_2d.size * 4
        + N_pad * out_features * orig_dtype.itemsize)
    cost = pl.CostEstimate(flops=int(flops),
                           transcendentals=int(N_pad * hidden_pad),
                           bytes_accessed=int(bytes_accessed))

    kernel = partial(mlp_kernel, approx_gelu=approx_gelu)

    out = pl.pallas_call(
        kernel,
        out_shape=jax.ShapeDtypeStruct((N_pad, out_features), orig_dtype),
        grid_spec=pltpu.PrefetchScalarGridSpec(
            num_scalar_prefetch=0,
            grid=grid,
            in_specs=[
                pl.BlockSpec((tm, in_features), lambda i, k: (i, 0)),
                pl.BlockSpec((in_features, tk), lambda i, k: (0, k)),
                pl.BlockSpec((1, tk), lambda i, k: (0, k)),
                pl.BlockSpec((tk, out_features), lambda i, k: (k, 0)),
                pl.BlockSpec((1, out_features), lambda i, k: (0, 0)),
            ],
            out_specs=pl.BlockSpec((tm, out_features), lambda i, k: (i, 0)),
            scratch_shapes=[pltpu.VMEM((tm, out_features), jnp.float32)],
        ),
        compiler_params=pltpu.CompilerParams(
            dimension_semantics=("parallel", "arbitrary"),
            vmem_limit_bytes=vmem_limit_bytes),
        cost_estimate=cost,
    )(x2d, w1, b1_2d, w2, b2_2d)

    if N_pad != N:
        out = out[:N]
    return out.reshape(*orig_shape[:-1], out_features)


def init_mlp_params(key, in_features, hidden_features, out_features,
                    dtype=jnp.float32):
    """Deterministic init mimicking nn.Linear's uniform(-1/sqrt(fan_in), ...)."""
    k1, k2, k3, k4 = jax.random.split(key, 4)
    bound1 = 1.0 / math.sqrt(in_features)
    bound2 = 1.0 / math.sqrt(hidden_features)
    w1 = jax.random.uniform(k1, (in_features, hidden_features),
                            minval=-bound1, maxval=bound1, dtype=dtype)
    b1 = jax.random.uniform(k2, (hidden_features,),
                            minval=-bound1, maxval=bound1, dtype=dtype)
    w2 = jax.random.uniform(k3, (hidden_features, out_features),
                            minval=-bound2, maxval=bound2, dtype=dtype)
    b2 = jax.random.uniform(k4, (out_features,),
                            minval=-bound2, maxval=bound2, dtype=dtype)
    return w1, b1, w2, b2


if __name__ == "__main__":
    # Lane-dense in/out feature dims; hidden=1000 exercises the hidden-padding
    # path (padded to 1024 -> 2 k-steps with tk=512); N=300 rows exercises the
    # row-padding path and the >=2-row-tile split (tm shrinks to 152 -> 2 tiles).
    batch, seq = 2, 150
    in_features, hidden_features, out_features = 128, 1000, 128

    key = jax.random.PRNGKey(0)
    kx, kp = jax.random.split(key)
    x = jax.random.normal(kx, (batch, seq, in_features), dtype=jnp.float32)
    w1, b1, w2, b2 = init_mlp_params(kp, in_features, hidden_features,
                                     out_features)

    # Pure-JAX reference (exact-GELU, high-precision matmuls).
    with jax.default_matmul_precision("highest"):
        h_ref = x @ w1 + b1
        h_ref = 0.5 * h_ref * (1.0 + lax.erf(h_ref / math.sqrt(2.0)))
        y_ref = h_ref @ w2 + b2

    # Default path: bf16 MXU operands, f32 accumulation.
    y_bf16 = mlp_forward(x, w1, b1, w2, b2)
    jax.block_until_ready(y_bf16)
    assert y_bf16.shape == (batch, seq, out_features)
    assert jnp.allclose(y_bf16, y_ref, atol=5e-2, rtol=5e-2), (
        "bf16 mismatch: max abs err = %e"
        % float(jnp.max(jnp.abs(y_bf16 - y_ref))))

    # Full-precision operand path.
    y_f32 = mlp_forward(x, w1, b1, w2, b2, compute_dtype=None)
    jax.block_until_ready(y_f32)
    assert y_f32.shape == (batch, seq, out_features)
    assert jnp.allclose(y_f32, y_ref, atol=5e-4, rtol=5e-4), (
        "f32 mismatch: max abs err = %e"
        % float(jnp.max(jnp.abs(y_f32 - y_ref))))

    print("KERNEL_OK")
</pallas_src>

<mosaic_0001>
module attributes {stable_mosaic.version = 11 : i64} {
  func.func @mlp_kernel(%arg0: i32, %arg1: i32, %arg2: memref<152x128xbf16, #tpu.memory_space<vmem>>, %arg3: memref<128x512xbf16, #tpu.memory_space<vmem>>, %arg4: memref<1x512xf32, #tpu.memory_space<vmem>>, %arg5: memref<512x128xbf16, #tpu.memory_space<vmem>>, %arg6: memref<1x128xf32, #tpu.memory_space<vmem>>, %arg7: memref<152x128xf32, #tpu.memory_space<vmem>>, %arg8: memref<152x128xf32, #tpu.memory_space<vmem>>) attributes {dimension_semantics = [#tpu.dimension_semantics<parallel>, #tpu.dimension_semantics<arbitrary>], iteration_bounds = array<i64: 2, 2>, scalar_prefetch = 0 : i64, scratch_operands = 1 : i64, tpu.core_type = #tpu.core_type<tc>, window_params = [{transform_indices = @transform_0, window_bounds = array<i64: 152, 128>}, {transform_indices = @transform_1, window_bounds = array<i64: 128, 512>}, {transform_indices = @transform_2, window_bounds = array<i64: 1, 512>}, {transform_indices = @transform_3, window_bounds = array<i64: 512, 128>}, {pipeline_mode = #tpu.pipeline_mode<synchronous>, transform_indices = @transform_4, window_bounds = array<i64: 1, 128>}, {transform_indices = @transform_5, window_bounds = array<i64: 152, 128>}]} {
    %c0_i32 = arith.constant 0 : i32
    %0 = arith.cmpi eq, %arg1, %c0_i32 : i32
    %1 = arith.extui %0 : i1 to i32
    %c0_i32_0 = arith.constant 0 : i32
    %2 = arith.cmpi ne, %1, %c0_i32_0 : i32
    scf.if %2 {
      %c0_17 = arith.constant 0 : index
      %c0_18 = arith.constant 0 : index
      %26 = vector.load %arg6[%c0_17, %c0_18] : memref<1x128xf32, #tpu.memory_space<vmem>>, vector<1x128xf32>
      %27 = vector.shape_cast %26 : vector<1x128xf32> to vector<1x128xf32>
      %28 = vector.broadcast %27 : vector<1x128xf32> to vector<152x128xf32>
      %c0_19 = arith.constant 0 : index
      %c0_20 = arith.constant 0 : index
      %29 = vector.load %arg8[%c0_19, %c0_20] : memref<152x128xf32, #tpu.memory_space<vmem>>, vector<152x128xf32>
      tpu.vector_store %arg8[%c0_19, %c0_20], %28 {strides = array<i32>} : memref<152x128xf32, #tpu.memory_space<vmem>>, vector<152x128xf32>,
    } else {
    }
    %c0 = arith.constant 0 : index
    %c0_1 = arith.constant 0 : index
    %3 = vector.load %arg2[%c0, %c0_1] : memref<152x128xbf16, #tpu.memory_space<vmem>>, vector<152x128xbf16>
    %c0_2 = arith.constant 0 : index
    %c0_3 = arith.constant 0 : index
    %4 = vector.load %arg3[%c0_2, %c0_3] : memref<128x512xbf16, #tpu.memory_space<vmem>>, vector<128x512xbf16>
    %cst = arith.constant dense<0.000000e+00> : vector<152x512xf32>
    %5 = tpu.matmul %3, %4, %cst {dimension_numbers = #tpu.dot_dimension_numbers<[1], [0], [0], [1], [0, 0, 1, 1], [], []>} : vector<152x128xbf16>, vector<128x512xbf16>, vector<152x512xf32> -> vector<152x512xf32>
    %c0_4 = arith.constant 0 : index
    %c0_5 = arith.constant 0 : index
    %6 = vector.load %arg4[%c0_4, %c0_5] : memref<1x512xf32, #tpu.memory_space<vmem>>, vector<1x512xf32>
    %7 = vector.broadcast %6 : vector<1x512xf32> to vector<152x512xf32>
    %8 = arith.addf %5, %7 : vector<152x512xf32>
    %cst_6 = arith.constant 5.000000e-01 : f32
    %9 = vector.broadcast %cst_6 : f32 to vector<152x512xf32>
    %10 = arith.mulf %9, %8 : vector<152x512xf32>
    %cst_7 = arith.constant 0.707106769 : f32
    %11 = vector.broadcast %cst_7 : f32 to vector<152x512xf32>
    %12 = arith.mulf %8, %11 : vector<152x512xf32>
    %13 = math.erf %12 : vector<152x512xf32>
    %cst_8 = arith.constant 1.000000e+00 : f32
    %14 = vector.broadcast %cst_8 : f32 to vector<152x512xf32>
    %15 = arith.addf %14, %13 : vector<152x512xf32>
    %16 = arith.mulf %10, %15 : vector<152x512xf32>
    %c0_9 = arith.constant 0 : index
    %c0_10 = arith.constant 0 : index
    %17 = vector.load %arg8[%c0_9, %c0_10] : memref<152x128xf32, #tpu.memory_space<vmem>>, vector<152x128xf32>
    %18 = arith.truncf %16 : vector<152x512xf32> to vector<152x512xbf16>
    %c0_11 = arith.constant 0 : index
    %c0_12 = arith.constant 0 : index
    %19 = vector.load %arg5[%c0_11, %c0_12] : memref<512x128xbf16, #tpu.memory_space<vmem>>, vector<512x128xbf16>
    %cst_13 = arith.constant dense<0.000000e+00> : vector<152x128xf32>
    %20 = tpu.matmul %18, %19, %cst_13 {dimension_numbers = #tpu.dot_dimension_numbers<[1], [0], [0], [1], [0, 0, 1, 1], [], []>} : vector<152x512xbf16>, vector<512x128xbf16>, vector<152x128xf32> -> vector<152x128xf32>
    %21 = arith.addf %17, %20 : vector<152x128xf32>
    %c0_14 = arith.constant 0 : index
    %c0_15 = arith.constant 0 : index
    %22 = vector.load %arg8[%c0_14, %c0_15] : memref<152x128xf32, #tpu.memory_space<vmem>>, vector<152x128xf32>
    tpu.vector_store %arg8[%c0_14, %c0_15], %21 {strides = array<i32>} : memref<152x128xf32, #tpu.memory_space<vmem>>, vector<152x128xf32>,
    %c1_i32 = arith.constant 1 : i32
    %23 = arith.cmpi eq, %arg1, %c1_i32 : i32
    %24 = arith.extui %23 : i1 to i32
    %c0_i32_16 = arith.constant 0 : i32
    %25 = arith.cmpi ne, %24, %c0_i32_16 : i32
    scf.if %25 {
      %c0_17 = arith.constant 0 : index
      %c0_18 = arith.constant 0 : index
      %26 = vector.load %arg8[%c0_17, %c0_18] : memref<152x128xf32, #tpu.memory_space<vmem>>, vector<152x128xf32>
      %c0_19 = arith.constant 0 : index
      %c0_20 = arith.constant 0 : index
      %27 = vector.load %arg7[%c0_19, %c0_20] : memref<152x128xf32, #tpu.memory_space<vmem>>, vector<152x128xf32>
      tpu.vector_store %arg7[%c0_19, %c0_20], %26 {strides = array<i32>} : memref<152x128xf32, #tpu.memory_space<vmem>>, vector<152x128xf32>,
    } else {
    }
    return
  }
  func.func @transform_0(%arg0: i32, %arg1: i32) -> (i32, i32) {
    %c0_i32 = arith.constant 0 : i32
    %c0_i32_0 = arith.constant 0 : i32
    return %arg0, %c0_i32 : i32, i32
  }
  func.func @transform_1(%arg0: i32, %arg1: i32) -> (i32, i32) {
    %c0_i32 = arith.constant 0 : i32
    %c0_i32_0 = arith.constant 0 : i32
    return %c0_i32, %arg1 : i32, i32
  }
  func.func @transform_2(%arg0: i32, %arg1: i32) -> (i32, i32) {
    %c0_i32 = arith.constant 0 : i32
    %c0_i32_0 = arith.constant 0 : i32
    return %c0_i32, %arg1 : i32, i32
  }
  func.func @transform_3(%arg0: i32, %arg1: i32) -> (i32, i32) {
    %c0_i32 = arith.constant 0 : i32
    %c0_i32_0 = arith.constant 0 : i32
    return %arg1, %c0_i32 : i32, i32
  }
  func.func @transform_4(%arg0: i32, %arg1: i32) -> (i32, i32) {
    %c0_i32 = arith.constant 0 : i32
    %c0_i32_0 = arith.constant 0 : i32
    %c0_i32_1 = arith.constant 0 : i32
    return %c0_i32, %c0_i32_0 : i32, i32
  }
  func.func @transform_5(%arg0: i32, %arg1: i32) -> (i32, i32) {
    %c0_i32 = arith.constant 0 : i32
    %c0_i32_0 = arith.constant 0 : i32
    return %arg0, %c0_i32 : i32, i32
  }
}

</mosaic_0001>

<bundles_post_ra>
// kernel: tpu_custom_call.1
= control target key start
LH: loop header
LB: loop body
LE: loop exit
PB: predicated region body
PF: predicated region fallthrough
CT: control target
= control target key end

     0   :  { %s4130_s0 = inlined_call_operand.hbm [shape: bf16[304,128], index: 0, kind: input, shape index: {}]   ;;  %s4131_s1 = inlined_call_operand.hbm [shape: bf16[128,1024], index: 1, kind: input, shape index: {}]   ;;  %s4132_s2 = inlined_call_operand.hbm [shape: f32[1,1024], index: 2, kind: input, shape index: {}]   ;;  %s4133_s3 = inlined_call_operand.hbm [shape: bf16[1024,128], index: 3, kind: input, shape index: {}]   ;;  %s4134_s4 = inlined_call_operand.vmem [shape: f32[1,128], index: 4, kind: input, shape index: {}]   ;;  %s4135_s5 = inlined_call_operand.hbm [shape: f32[304,128], index: 5, kind: output, shape index: {}]  }
   0x1   :  { %4149 = sst [smem:[#allocation42_spill]] %s4130_s0 }
   0x2   :  { %4150 = sst [smem:[#allocation43_spill]] %s4131_s1 }
   0x3   :  { %4151 = sst [smem:[#allocation44_spill]] %s4135_s5 }
   0x4   :  { %10 = vsyncpa [#allocation4], 0 }
   0x5   :  { %12 = vsyncpa [#allocation4 + $0x1], 0 }
   0x6   :  { %13 = vsyncpa [#allocation7], 0 }
   0x7   :  { %15 = vsyncpa [#allocation7 + $0x1], 0 }
   0x8   :  { %16 = vsyncpa [#allocation10], 0 }
   0x9   :  { %18 = vsyncpa [#allocation10 + $0x1], 0 }
   0xa   :  { %19 = vsyncpa [#allocation5], 0 }
   0xb   :  { %21 = vsyncpa [#allocation5 + $0x1], 0  ;;  %s3032_s18 = smov 0   ;;  %s3034_s19 = smov 0  }
   0xc   :  { %s3036_s20 = smov 0   ;;  %s3038_s21 = smov 0  }
   0xd   :  { %s3040_s22 = smov 0   ;;  %s3042_s23 = smov 0  }
   0xe   :  { %s3044_s24 = smov 0   ;;  %s3046_s25 = smov 0  }
   0xf   :  { %s3048_s26 = smov 0   ;;  %s3050_s27 = smov 0  }
  0x10   :  { %s3052_s28 = smov 0  }
  0x11 LB: > { %4152 = sst [smem:[#allocation16_spill]] %s2955_s20  ;;  %p54_p0 = scmp.eq.s32.totalorder %s2987_s28, 0  ;;  %s2987_s28 = sphi %s3052_s28, %s27_s28   ;;  %s2983_s27 = sphi %s3050_s27, %s4236_s27   ;;  %s2979_s26 = sphi %s3048_s26, %s4235_s26   ;;  %s2975_s25 = sphi %s3046_s25, %s4227_s25   ;;  %s2971_s24 = sphi %s3044_s24, %s4234_s24   ;;  %s2967_s23 = sphi %s3042_s23, %s4226_s23   ;;  %s2963_s22 = sphi %s3040_s22, %s4233_s22   ;;  %s2959_s21 = sphi %s3038_s21, %s4232_s21   ;;  %s2955_s20 = sphi %s3036_s20, %s4224_s20   ;;  %s2951_s19 = sphi %s3034_s19, %s4231_s19   ;;  %s2947_s18 = sphi %s3032_s18, %s4230_s18  }
  0x12   : > { %4153 = sst [smem:[#allocation17_spill]] %s2959_s21  ;;  %s72_s29 = sadd.s32 1, %s2955_s20 }
  0x13   : > { %4154 = sst [smem:[#allocation18_spill]] %s2967_s23  ;;  %p79_p1 = scmp.ne.s32.totalorder %s2955_s20, %s2951_s19 }
  0x14   : > { %4155 = sst [smem:[#allocation19_spill]] %s2975_s25  ;;  %p85_p2 = scmp.ne.s32.totalorder %s2951_s19, %s2947_s18 }
  0x15   : > { %4156 = sst [smem:[#allocation20_spill]] %s2983_s27  ;;  %p4139_p3 = scmp.lt.s32.totalorder %s2987_s28, 4 }
  0x16   : > { %4157 = sst [smem:[#allocation21_spill]] %s2987_s28  ;;  %p81_p4 = por %p79_p1, %p54_p0 }
  0x17   : > { %s232_s30 = sand.u32 1, %s2987_s28   ;;  %s3098_s6 = sand.u32 1, %s2955_s20  }
  0x18   : > { %s4136_s7 = sshll.u32 %s3098_s6, 8  ;;  %s2221_s8 = sshll.u32 %s2979_s26, 8 }
  0x19   : > { %s4158_s1 = sld [smem:[#allocation43_spill]]  ;;  %s236_s12 = scalar_lea.vmem [#allocation6], %s4136_s7 }
  0x1a   : > { %s243_s13 = sshll.u32 %s236_s12, 4  ;;  %p3109_p5 = pnand %p4139_p3, %p81_p4  ;;  %s244_s13 = int_to_ptr.vmem [resolvable:$true] %s243_s13 }
  0x1b   : > { %p2136_p6 = scmp.ge.s32.totalorder %s2987_s28, 1  ;;  %s3114_s15 = scalar_lea.sflag [#allocation7], %s232_s30 }
  0x1c   : > { %p4138_p7 = pneg %p3109_p5  ;;  %s2760_s16 = scalar_lea.vmem %s244_s13, 4096 }
  0x1d   : > { %p2761_p8 = scmp.ne.s32.totalorder %s244_s13, %s2760_s16  ;;  %s2989_s17 = smov [#allocation6]  }
  0x1f   : > { %s242_s11 = scalar_lea.hbm %s4158_s1, %s2221_s8  ;;  %p2763_p9 = pnand %p2761_p8, %p4138_p7 }
  0x20   : > { %s2765_s8 = sshll.u32 %s2989_s17, 4  ;;  %s2766_s8 = int_to_ptr.vmem [resolvable:$false] %s2765_s8 }
  0x21   : > { %p2764_p10 = pneg %p2763_p9  ;;  %s2767_s9 = scalar_lea.vmem %s2766_s8, 8192 }
  0x22   : > { %p2768_p11 = scmp.lt.s32.totalorder %s244_s13, %s2766_s8  ;;  %p2769_p12 = scmp.lt.s32.totalorder %s2767_s9, %s2760_s16 }
  0x24   : > { %p2770_p13 = por %p2769_p12, %p2768_p11 }
  0x26   : > { %p2771_p1 = pnand %p2770_p13, %p2764_p10 }
  0x28   : > { %2774 = shalt.err (!%p2771_p1)
}
  0x29   : > { %s2990_s10 = smov 512   ;;  %s2991_s30 = smov 256  }
  0x2a   : > { %s2992_s12 = smov 16   ;;  %p291_p4 = scmp.lt.s32.totalorder %s2987_s28, 5 }
  0x2b   : > { %2396 = dma.hbm_to_vmem [thread:$0]  (!%p3109_p5), %s242_s11, 4096, %s244_s13, %s3114_s15, %s2990_s10, %s2991_s30, %s2992_s12  }
  0x2c   : > { %p3127_p8 = pnand %p2136_p6, %p291_p4  ;;  %s3132_s17 = sadd.s32 4294967295, %s2987_s28  }
  0x2d   : > { %s2123_s8 = sadd.s32 4294967294, %s2987_s28   ;;  %s36_s9 = sadd.s32 1, %s2979_s26 }
  0x2e   : > { %s39_s7 = sadd.s32 1, %s2983_s27  ;;  %p37_p9 = scmp.ge.s32.totalorder %s36_s9, 2 }
  0x2f   : > { %s46_s11 = sadd.s32 1, %s2967_s23  ;;  %p53_p10 = scmp.ne.s32.totalorder %s2967_s23, %s2963_s22 }
  0x30   : > { %p59_p11 = scmp.ne.s32.totalorder %s2963_s22, %s2959_s21  ;;  %s4238_s9 = smov (%p37_p9, %s36_s9), 0 }
  0x31   : > { %4161 = sst [smem:[#allocation22_spill]] %s4238_s9  ;;  %s4240_s7 = smov (!%p37_p9, %s39_s7), %s2983_s27 }
  0x32   : > { %p3150_p6 = por %p54_p0, %p53_p10  ;;  %p60_p12 = scmp.eq.s32.totalorder %s3132_s17, 0 }
  0x33   : > { %p41_p13 = scmp.ge.s32.totalorder %s4240_s7, 2  ;;  %s69_s10 = ssub.s32 %s2979_s26, %s4238_s9 }
  0x34   : > { %p3160_p1 = por %p60_p12, %p59_p11  ;;  %p70_p4 = scmp.eq.s32.totalorder %s69_s10, 0 }
  0x35   : > { %s4242_s7 = smov (%p41_p13, %s4240_s7), 0  ;;  %p3176_p0 = por %p85_p2, %p60_p12 }
  0x36   : > { %4164 = sst [smem:[#allocation23_spill]] %s4242_s7  ;;  %s43_s1 = ssub.s32 %s2983_s27, %s4242_s7 }
  0x37   : > { %s3169_s12 = scalar_select %p70_p4, %s2955_s20, %s72_s29  }
  0x38   : > { %p44_p9 = scmp.eq.s32.totalorder %s43_s1, 0  ;;  %p182_p7 = scmp.eq.s32.totalorder %s3132_s17, 3 }
  0x39   : > { %4165 = sst [smem:[#allocation24_spill]] %s3169_s12  ;;  %p188_p3 = scmp.eq.s32.totalorder %s2123_s8, 3 }
  0x3a   : > { %s211_s9 = sand.u32 1, %s2967_s23   ;;  %p3188_p13 = por %p182_p7, %p53_p10 }
  0x3b   : > { %s3183_s25 = scalar_select %p44_p9, %s2967_s23, %s46_s11  }
  0x3c   : > { %p3195_p4 = por %p188_p3, %p59_p11  ;;  %s2377_s18 = smul.u32 76, %s211_s9 }
  0x3d   : > { %4167 = sst [smem:[#allocation25_spill]] %s3183_s25  ;;  %s2220_s7 = smul.u32 1216, %s2983_s27 }
  0x3e   : > { %s4169_s29 = scalar_select %p3195_p4, 1, 0 }
  0x3f   : > { %p4171_p2 = scmp.lt.s32.totalorder %s2987_s28, 4  ;;  %s4173_s0 = sld [smem:[#allocation42_spill]] }
  0x40   : > { %4170 = sst [smem:[#allocation26_spill]] %s4169_s29  ;;  %s215_s23 = scalar_lea.vmem [#allocation3], %s2377_s18 }
  0x41   : > { %p3204_p12 = pnand %p4171_p2, %p3150_p6  ;;  %s222_s12 = sshll.u32 %s215_s23, 4  ;;  %s223_s12 = int_to_ptr.vmem [resolvable:$true] %s222_s12 }
  0x42   : > { %s2130_s20 = sshll.u32 %s3098_s6, 2  ;;  %s212_s21 = scalar_lea.sflag [#allocation4], %s211_s9 }
  0x43   : > { %p2777_p3 = pneg %p3204_p12  ;;  %s2788_s29 = scalar_lea.vmem %s223_s12, 1216 }
  0x44   : > { %p2789_p7 = scmp.ne.s32.totalorder %s223_s12, %s2788_s29  ;;  %s2993_s13 = smov [#allocation3]  }
  0x45   : > { %s221_s25 = scalar_lea.hbm %s4173_s0, %s2220_s7  ;;  %s2793_s27 = sshll.u32 %s2993_s13, 4  ;;  %s2794_s27 = int_to_ptr.vmem [resolvable:$false] %s2793_s27 }
  0x46   : > { %p2791_p10 = pnand %p2789_p7, %p2777_p3  ;;  %s2795_s28 = scalar_lea.vmem %s2794_s27, 2432 }
  0x47   : > { %p2796_p6 = scmp.lt.s32.totalorder %s223_s12, %s2794_s27  ;;  %p2797_p9 = scmp.lt.s32.totalorder %s2795_s28, %s2788_s29 }
  0x48   : > { %p2792_p11 = pneg %p2791_p10 }
  0x49   : > { %p2798_p2 = por %p2797_p9, %p2796_p6 }
  0x4b   : > { %p2799_p4 = pnand %p2798_p2, %p2792_p11 }
  0x4d   : > { %2802 = shalt.err (!%p2799_p4)
}
  0x4e   : > { %s2994_s7 = smov 64   ;;  %s2995_s23 = smov 4  }
  0x4f   : > { %2393 = dma.hbm_to_vmem [thread:$0]  (!%p3204_p12), %s221_s25, 1216, %s223_s12, %s212_s21, %s2994_s7, %s2994_s7, %s2995_s23  }
  0x50   : > { %s2222_s9 = sshll.u32 %s2979_s26, 6  ;;  %s257_s27 = scalar_lea.vmem [#allocation8], %s2130_s20 }
  0x51   : > { %s263_s11 = scalar_lea.hbm %s4132_s2, %s2222_s9  ;;  %s265_s28 = sshll.u32 %s257_s27, 4  ;;  %s266_s28 = int_to_ptr.vmem [resolvable:$true] %s265_s28 }
  0x52   : > { %s2816_s29 = scalar_lea.vmem %s266_s28, 64  ;;  %p4174_p3 = pneg %p3109_p5 }
  0x53   : > { %p2817_p4 = scmp.ne.s32.totalorder %s266_s28, %s2816_s29  ;;  %s2996_s13 = smov [#allocation8]  }
  0x54   : > { %s2821_s1 = sshll.u32 %s2996_s13, 4  ;;  %s2822_s1 = int_to_ptr.vmem [resolvable:$false] %s2821_s1 }
  0x55   : > { %p2819_p7 = pnand %p2817_p4, %p4174_p3  ;;  %s2823_s0 = scalar_lea.vmem %s2822_s1, 128 }
  0x56   : > { %p2824_p11 = scmp.lt.s32.totalorder %s266_s28, %s2822_s1  ;;  %p2825_p12 = scmp.lt.s32.totalorder %s2823_s0, %s2816_s29 }
  0x57   : > { %p2820_p10 = pneg %p2819_p7 }
  0x58   : > { %p2826_p6 = por %p2825_p12, %p2824_p11 }
  0x5a   : > { %p2827_p9 = pnand %p2826_p6, %p2820_p10 }
  0x5c   : > { %2830 = shalt.err (!%p2827_p9)
}
  0x5d   : > { %2399 = dma.hbm_to_vmem [thread:$0]  (!%p3109_p5), %s263_s11, 64, %s266_s28, %s3114_s15  }
  0x5e   : > { %s2223_s20 = sshll.u32 %s2979_s26, 12  ;;  %s4175_s9 = sshll.u32 %s3098_s6, 8 }
  0x5f   : > { %s282_s12 = scalar_lea.hbm %s4133_s3, %s2223_s20  ;;  %s276_s18 = scalar_lea.vmem [#allocation9], %s4175_s9 }
  0x60   : > { %s283_s8 = sshll.u32 %s276_s18, 4  ;;  %s273_s0 = scalar_lea.sflag [#allocation10], %s3098_s6  ;;  %s284_s8 = int_to_ptr.vmem [resolvable:$true] %s283_s8 }
  0x61   : > { %s2844_s27 = scalar_lea.vmem %s284_s8, 4096  ;;  %p4176_p4 = pmov %p4174_p3 }
  0x62   : > { %p2845_p2 = scmp.ne.s32.totalorder %s284_s8, %s2844_s27  ;;  %s2997_s29 = smov [#allocation9]  }
  0x63   : > { %s2849_s13 = sshll.u32 %s2997_s29, 4  ;;  %s2850_s13 = int_to_ptr.vmem [resolvable:$false] %s2849_s13 }
  0x64   : > { %p2847_p3 = pnand %p2845_p2, %p4176_p4  ;;  %s2851_s15 = scalar_lea.vmem %s2850_s13, 8192 }
  0x65   : > { %p2852_p10 = scmp.lt.s32.totalorder %s284_s8, %s2850_s13  ;;  %p2853_p11 = scmp.lt.s32.totalorder %s2851_s15, %s2844_s27 }
  0x66   : > { %p2848_p7 = pneg %p2847_p3 }
  0x67   : > { %p2854_p12 = por %p2853_p11, %p2852_p10 }
  0x69   : > { %p2855_p6 = pnand %p2854_p12, %p2848_p7 }
  0x6b   : > { %2858 = shalt.err (!%p2855_p6)
}
  0x6c   : > { %2402 = dma.hbm_to_vmem [thread:$0]  (!%p3109_p5), %s282_s12, 4096, %s284_s8, %s273_s0, %s2994_s7, %s2994_s7, %s2995_s23  }
  0x6d   : > { %295 = sbr.rel (%p3127_p8) target bundleno = 750 (0x2ee), region = 40 }
  0x72   : > { %s3247_s6 = sand.u32 1, %s2963_s22  }
  0x73   : > { %s2378_s11 = smul.u32 76, %s3247_s6  ;;  %s298_s28 = scalar_lea.sflag [#allocation4], %s3247_s6 }
  0x75   : > { %s3251_s1 = scalar_lea.vmem [#allocation3], %s2378_s11 }
  0x76   : > { %2930 = dma.done.wait (%p3160_p1), %s298_s28, 1216  }
  0x77   : > { %2932 = vsyncadd (%p3160_p1), %s298_s28, 4294966080  ;;  %s306_s14 = sand.u32 1, %s3132_s17   ;;  %s308_s16 = sand.u32 1, %s2951_s19  }
  0x78   : > { %s2137_s7 = sshll.u32 %s308_s16, 8  ;;  %s307_s23 = scalar_lea.sflag [#allocation7], %s306_s14 }
  0x79   : > { %s3259_s20 = scalar_lea.vmem [#allocation6], %s2137_s7 }
  0x7a   : > { %2934 = dma.done.wait (%p3176_p0), %s307_s23, 4160  }
  0x7b   : > { %2936 = vsyncadd (%p3176_p0), %s307_s23, 4294963136  ;;  %s2138_s21 = sshll.u32 %s308_s16, 2  ;;  %s325_s30 = scalar_lea.sflag [#allocation10], %s308_s16 }
  0x7c   : > { %s3265_s25 = scalar_lea.vmem [#allocation8], %s2138_s21  ;;  %s3267_s12 = scalar_lea.vmem [#allocation9], %s2137_s7 }
  0x7d   : > { %2938 = dma.done.wait (%p3176_p0), %s325_s30, 4096  }
  0x7e   : > { %2940 = vsyncadd (%p3176_p0), %s325_s30, 4294963200  ;;  %s2379_s17 = smul.u32 152, %s3247_s6  ;;  %p2140_p5 = scmp.ne.s32.totalorder %s2971_s24, 0 }
  0x80   : > { %s3274_s9 = scalar_lea.vmem [#allocation11], %s2379_s17  ;;  %379 = sbr.rel (%p2140_p5) target bundleno = 144 (0x90), region = 60 }
  0x85   : > { %v2141_v0 = vld [vmem:[%s4134_s4] ss:$0 sm:$0xff] }
  0x86   : > { %387 = vst [vmem:[#allocation2] sm:$0xff] %v2141_v0  ;;  %388 = vst [vmem:[#allocation2 + $0x38] sm:$0xff] %v2141_v0 }
  0x87   : > { %389 = vst [vmem:[#allocation2 + $0x50] sm:$0xff] %v2141_v0  ;;  %390 = vst [vmem:[#allocation2 + $0x18] sm:$0xff] %v2141_v0 }
  0x88   : > { %391 = vst [vmem:[#allocation2 + $0x30] sm:$0xff] %v2141_v0  ;;  %392 = vst [vmem:[#allocation2 + $0x68] sm:$0xff] %v2141_v0 }
  0x89   : > { %393 = vst [vmem:[#allocation2 + $0x78] sm:$0xff] %v2141_v0  ;;  %394 = vst [vmem:[#allocation2 + $0x80] sm:$0xff] %v2141_v0 }
  0x8a   : > { %395 = vst [vmem:[#allocation2 + $0x8] sm:$0xff] %v2141_v0  ;;  %396 = vst [vmem:[#allocation2 + $0x88] sm:$0xff] %v2141_v0 }
  0x8b   : > { %397 = vst [vmem:[#allocation2 + $0x28] sm:$0xff] %v2141_v0  ;;  %398 = vst [vmem:[#allocation2 + $0x40] sm:$0xff] %v2141_v0 }
  0x8c   : > { %399 = vst [vmem:[#allocation2 + $0x58] sm:$0xff] %v2141_v0  ;;  %400 = vst [vmem:[#allocation2 + $0x10] sm:$0xff] %v2141_v0 }
  0x8d   : > { %401 = vst [vmem:[#allocation2 + $0x20] sm:$0xff] %v2141_v0  ;;  %402 = vst [vmem:[#allocation2 + $0x70] sm:$0xff] %v2141_v0 }
  0x8e   : > { %403 = vst [vmem:[#allocation2 + $0x60] sm:$0xff] %v2141_v0  ;;  %404 = vst [vmem:[#allocation2 + $0x90] sm:$0xff] %v2141_v0 }
  0x8f   : > { %405 = vst [vmem:[#allocation2 + $0x48] sm:$0xff] %v2141_v0 }
  0x90 PF: > { %v2505_v1 = vld [vmem:[%s3259_s20 + $0xe4] ss:$16 sps:$4 sm:$0xff]   ;;  %v2507_v2 = vld [vmem:[%s3259_s20 + $0xec] ss:$16 sps:$4 sm:$0xff]   ;;  %v2998_v3 = vmov 0   ;;  %p2216_p8 = scmp.ne.s32.totalorder %s2971_s24, 1 }
  0x91   : > { %729 = vmatprep.mubr.bf16.mxu0 %v2998_v3  ;;  %860 = vmatprep.mubr.bf16.mxu1 %v2998_v3  ;;  %v2509_v4 = vld [vmem:[%s3259_s20 + $0xe0] ss:$16 sps:$4 sm:$0xff]   ;;  %v2510_v5 = vld [vmem:[%s3259_s20 + $0xe8] ss:$16 sps:$4 sm:$0xff]   ;;  %v2511_v6 = vld [vmem:[%s3259_s20 + $0xc4] ss:$16 sps:$4 sm:$0xff]  }
  0x92   : > { %697 = vmatprep.subr.bf16.mxu0 %v2505_v1  ;;  %828 = vmatprep.subr.bf16.mxu1 %v2507_v2  ;;  %v2513_v7 = vld [vmem:[%s3259_s20 + $0xcc] ss:$16 sps:$4 sm:$0xff]   ;;  %v2515_v8 = vld [vmem:[%s3259_s20 + $0xc0] ss:$16 sps:$4 sm:$0xff]   ;;  %v2516_v9 = vld [vmem:[%s3259_s20 + $0xc8] ss:$16 sps:$4 sm:$0xff]  }
  0x93   : > { %698 = vmatpush1.bf16.msra.mxu0 %v2509_v4  ;;  %829 = vmatpush1.bf16.msra.mxu1 %v2510_v5  ;;  %v2517_v10 = vld [vmem:[%s3259_s20 + $0xa4] ss:$16 sps:$4 sm:$0xff]   ;;  %v2519_v11 = vld [vmem:[%s3259_s20 + $0xac] ss:$16 sps:$4 sm:$0xff]   ;;  %v2521_v12 = vld [vmem:[%s3259_s20 + $0xa0] ss:$16 sps:$4 sm:$0xff]  }
  0x94   : > { %699 = vmatprep.subr.bf16.mxu0 %v2511_v6  ;;  %830 = vmatprep.subr.bf16.mxu1 %v2513_v7  ;;  %v2522_v13 = vld [vmem:[%s3259_s20 + $0xa8] ss:$16 sps:$4 sm:$0xff]   ;;  %v2523_v14 = vld [vmem:[%s3259_s20 + $0x84] ss:$16 sps:$4 sm:$0xff]   ;;  %v2525_v15 = vld [vmem:[%s3259_s20 + $0x8c] ss:$16 sps:$4 sm:$0xff]  }
  0x95   : > { %v2527_v16 = vld [vmem:[%s3259_s20 + $0x80] ss:$16 sps:$4 sm:$0xff]   ;;  %v2528_v17 = vld [vmem:[%s3259_s20 + $0x88] ss:$16 sps:$4 sm:$0xff]   ;;  %v2529_v18 = vld [vmem:[%s3259_s20 + $0x64] ss:$16 sps:$4 sm:$0xff]  }
  0x96   : > { %v2531_v19 = vld [vmem:[%s3259_s20 + $0x6c] ss:$16 sps:$4 sm:$0xff]   ;;  %v2533_v20 = vld [vmem:[%s3259_s20 + $0x60] ss:$16 sps:$4 sm:$0xff]   ;;  %v2534_v21 = vld [vmem:[%s3259_s20 + $0x68] ss:$16 sps:$4 sm:$0xff]  }
  0x97   : > { %700 = vmatpush1.bf16.msra.mxu0 %v2515_v8  ;;  %831 = vmatpush1.bf16.msra.mxu1 %v2516_v9  ;;  %v2535_v22 = vld [vmem:[%s3259_s20 + $0x44] ss:$16 sps:$4 sm:$0xff]   ;;  %v2537_v23 = vld [vmem:[%s3259_s20 + $0x4c] ss:$16 sps:$4 sm:$0xff]   ;;  %v2539_v24 = vld [vmem:[%s3259_s20 + $0x40] ss:$16 sps:$4 sm:$0xff]  }
  0x98   : > { %701 = vmatprep.subr.bf16.mxu0 %v2517_v10  ;;  %832 = vmatprep.subr.bf16.mxu1 %v2519_v11  ;;  %v2540_v25 = vld [vmem:[%s3259_s20 + $0x48] ss:$16 sps:$4 sm:$0xff]   ;;  %v2541_v26 = vld [vmem:[%s3259_s20 + $0x24] ss:$16 sps:$4 sm:$0xff]   ;;  %v2543_v27 = vld [vmem:[%s3259_s20 + $0x2c] ss:$16 sps:$4 sm:$0xff]  }
  0x99   : > { %v2545_v28 = vld [vmem:[%s3259_s20 + $0x20] ss:$16 sps:$4 sm:$0xff]   ;;  %v2546_v29 = vld [vmem:[%s3259_s20 + $0x28] ss:$16 sps:$4 sm:$0xff]   ;;  %v2547_v30 = vld [vmem:[%s3259_s20 + $0x4] ss:$16 sps:$4 sm:$0xff]  }
  0x9a   : > { %v2549_v31 = vld [vmem:[%s3259_s20 + $0xc] ss:$16 sps:$4 sm:$0xff]   ;;  %v2551_v32 = vld [vmem:[%s3259_s20] ss:$16 sps:$4 sm:$0xff]   ;;  %v2552_v33 = vld [vmem:[%s3259_s20 + $0x8] ss:$16 sps:$4 sm:$0xff]  }
  0x9b   : > { %702 = vmatpush1.bf16.msra.mxu0 %v2521_v12  ;;  %833 = vmatpush1.bf16.msra.mxu1 %v2522_v13  ;;  %v2553_v34 = vld [vmem:[%s3251_s1] sm:$0xff]   ;;  %v2563_v35 = vld [vmem:[%s3267_s12 + $0x78] sm:$0xff]   ;;  %v2562_v63 = vld [vmem:[%s3251_s1 + $0x48] ss:$0 sps:$4 sm:$0xff]   ;;  %v459_v12 = vlaneseq }
  0x9c   : > { %703 = vmatprep.subr.bf16.mxu0 %v2523_v14  ;;  %834 = vmatprep.subr.bf16.mxu1 %v2525_v15  ;;  %v2564_v36 = vld [vmem:[%s3267_s12 + $0xf8] sm:$0xff]   ;;  %v2567_v39 = vld [vmem:[%s3267_s12 + $0x70] sm:$0xff]   ;;  %v2571_v44 = vld [vmem:[%s3267_s12 + $0x68] sm:$0xff]  }
  0x9d   : > { %v2565_v37 = vld [vmem:[%s3267_s12 + $0x38] sm:$0xff]   ;;  %v2568_v40 = vld [vmem:[%s3267_s12 + $0xf0] sm:$0xff]   ;;  %v2572_v45 = vld [vmem:[%s3267_s12 + $0xe8] sm:$0xff]   ;;  %v460_v13 = vshrl.u32 %v459_v12, 7 }
  0x9e   : > { %v2566_v38 = vld [vmem:[%s3267_s12 + $0xb8] sm:$0xff]   ;;  %v2569_v42 = vld [vmem:[%s3267_s12 + $0x30] sm:$0xff]   ;;  %v2573_v46 = vld [vmem:[%s3267_s12 + $0x28] sm:$0xff]  }
  0x9f   : > { %704 = vmatpush1.bf16.msra.mxu0 %v2527_v16  ;;  %835 = vmatpush1.bf16.msra.mxu1 %v2528_v17  ;;  %v2554_v41 = vld [vmem:[%s3251_s1 + $0x8] sm:$0xff]   ;;  %v2575_v48 = vld [vmem:[%s3267_s12 + $0x60] sm:$0xff]   ;;  %v461_v14 = vsub.s32 0, %v460_v13  ;;  %v457_v15 = vld [vmem:[%s3265_s25] sm:$0xf]  ;;  %v469_v16 = vsub.s32 2, %v460_v13 }
  0xa0   : > { %705 = vmatprep.subr.bf16.mxu0 %v2529_v18  ;;  %836 = vmatprep.subr.bf16.mxu1 %v2531_v19  ;;  %v2570_v43 = vld [vmem:[%s3267_s12 + $0xb0] sm:$0xff]   ;;  %v2574_v47 = vld [vmem:[%s3267_s12 + $0xa8] sm:$0xff]   ;;  %v2576_v49 = vld [vmem:[%s3267_s12 + $0xe0] sm:$0xff]   ;;  %v465_v17 = vsub.s32 1, %v460_v13  ;;  %v473_v19 = vsub.s32 3, %v460_v13 }
  0xa1   : > { %v2555_v50 = vld [vmem:[%s3251_s1 + $0x10] sm:$0xff]   ;;  %v2556_v57 = vld [vmem:[%s3251_s1 + $0x18] sm:$0xff]   ;;  %v2557_v58 = vld [vmem:[%s3251_s1 + $0x20] sm:$0xff]   ;;  %v3375_v18 = vrot.slane %v457_v15, %v461_v14 }
  0xa2   : > { %v2577_v51 = vld [vmem:[%s3267_s12 + $0x20] sm:$0xff]   ;;  %v2579_v53 = vld [vmem:[%s3267_s12 + $0x58] sm:$0xff]   ;;  %v2583_v0 = vld [vmem:[%s3267_s12 + $0x50] sm:$0xff]  }
  0xa3   : > { %706 = vmatpush1.bf16.msra.mxu0 %v2533_v20  ;;  %837 = vmatpush1.bf16.msra.mxu1 %v2534_v21  ;;  %v2578_v52 = vld [vmem:[%s3267_s12 + $0xa0] sm:$0xff]   ;;  %v2580_v54 = vld [vmem:[%s3267_s12 + $0xd8] sm:$0xff]   ;;  %v2584_v1 = vld [vmem:[%s3267_s12 + $0xd0] sm:$0xff]   ;;  %v3377_v20 = vrot.slane %v457_v15, %v469_v16 }
  0xa4   : > { %707 = vmatprep.subr.bf16.mxu0 %v2535_v22  ;;  %838 = vmatprep.subr.bf16.mxu1 %v2537_v23  ;;  %v2581_v55 = vld [vmem:[%s3267_s12 + $0x18] sm:$0xff]   ;;  %v2561_v62 = vld [vmem:[%s3251_s1 + $0x40] sm:$0xff]   ;;  %v3379_v23 = vrot.slane %v457_v15, %v465_v17 }
  0xa5   : > { %v2582_v56 = vld [vmem:[%s3267_s12 + $0x98] sm:$0xff]   ;;  %v2585_v2 = vld [vmem:[%s3267_s12 + $0x10] sm:$0xff]   ;;  %v2587_v5 = vld [vmem:[%s3267_s12 + $0x48] sm:$0xff]  }
  0xa6   : > { %v2558_v59 = vld [vmem:[%s3251_s1 + $0x28] sm:$0xff]   ;;  %v2559_v60 = vld [vmem:[%s3251_s1 + $0x30] sm:$0xff]   ;;  %v2560_v61 = vld [vmem:[%s3251_s1 + $0x38] sm:$0xff]  }
  0xa7   : > { %708 = vmatpush1.bf16.msra.mxu0 %v2539_v24  ;;  %839 = vmatpush1.bf16.msra.mxu1 %v2540_v25  ;;  %v2586_v4 = vld [vmem:[%s3267_s12 + $0x90] sm:$0xff]   ;;  %v2588_v6 = vld [vmem:[%s3267_s12 + $0xc8] sm:$0xff]   ;;  %v2592_v9 = vld [vmem:[%s3267_s12 + $0xc0] sm:$0xff]  }
  0xa8   : > { %709 = vmatprep.subr.bf16.mxu0 %v2541_v26  ;;  %840 = vmatprep.subr.bf16.mxu1 %v2543_v27  ;;  %v2589_v7 = vld [vmem:[%s3267_s12 + $0x8] sm:$0xff]   ;;  %v2593_v10 = vld [vmem:[%s3267_s12] sm:$0xff]   ;;  %v3382_v26 = vrot.slane %v457_v15, %v473_v19 }
  0xa9   : > { %v2590_v8 = vld [vmem:[%s3267_s12 + $0x88] sm:$0xff]   ;;  %v2594_v11 = vld [vmem:[%s3267_s12 + $0x80] sm:$0xff]  }
  0xab   : > { %710 = vmatpush1.bf16.msra.mxu0 %v2545_v28  ;;  %841 = vmatpush1.bf16.msra.mxu1 %v2546_v29 }
  0xac   : > { %711 = vmatprep.subr.bf16.mxu0 %v2547_v30  ;;  %842 = vmatprep.subr.bf16.mxu1 %v2549_v31 }
  0xaf   : > { %712 = vmatpush1.bf16.msra.mxu0 %v2551_v32  ;;  %843 = vmatpush1.bf16.msra.mxu1 %v2552_v33 }
  0xb0   : > { %2225 = vmatprep.subr.bf16.mxu0 %v2563_v35  ;;  %2301 = vmatprep.subr.bf16.mxu1 %v2564_v36 }
  0xb2   : > { %730 = vmatmul.mubr.bf16.vlgmr.msra.gmra.mxu0 %v2553_v34  ;;  %861 = vmatmul.mubr.bf16.vlgmr.msra.gmra.mxu1 %v2553_v34 }
  0xb3   : > { %739 = vmatprep.mubr.bf16.mxu0 %v2998_v3  ;;  %870 = vmatprep.mubr.bf16.mxu1 %v2998_v3 }
  0xb4   : > { %2226 = vmatpush3.bf16.msra.mxu0 %v2565_v37  ;;  %2302 = vmatpush3.bf16.msra.mxu1 %v2566_v38 }
  0xb5   : > { %2227 = vmatprep.subr.bf16.mxu0 %v2567_v39  ;;  %2303 = vmatprep.subr.bf16.mxu1 %v2568_v40 }
  0xb8   : > { %2228 = vmatpush3.bf16.msra.mxu0 %v2569_v42  ;;  %2304 = vmatpush3.bf16.msra.mxu1 %v2570_v43 }
  0xb9   : > { %2229 = vmatprep.subr.bf16.mxu0 %v2571_v44  ;;  %2305 = vmatprep.subr.bf16.mxu1 %v2572_v45 }
  0xba   : > { %740 = vmatmul.mubr.bf16.gmra.mxu0 %v2554_v41  ;;  %871 = vmatmul.mubr.bf16.gmra.mxu1 %v2554_v41 }
  0xbb   : > { %749 = vmatprep.mubr.bf16.mxu0 %v2998_v3  ;;  %880 = vmatprep.mubr.bf16.mxu1 %v2998_v3 }
  0xbc   : > { %2230 = vmatpush3.bf16.msra.mxu0 %v2573_v46  ;;  %2306 = vmatpush3.bf16.msra.mxu1 %v2574_v47 }
  0xbd   : > { %2231 = vmatprep.subr.bf16.mxu0 %v2575_v48  ;;  %2307 = vmatprep.subr.bf16.mxu1 %v2576_v49 }
  0xc0   : > { %2232 = vmatpush3.bf16.msra.mxu0 %v2577_v51  ;;  %2308 = vmatpush3.bf16.msra.mxu1 %v2578_v52 }
  0xc1   : > { %2233 = vmatprep.subr.bf16.mxu0 %v2579_v53  ;;  %2309 = vmatprep.subr.bf16.mxu1 %v2580_v54 }
  0xc2   : > { %750 = vmatmul.mubr.bf16.gmra.mxu0 %v2555_v50  ;;  %881 = vmatmul.mubr.bf16.gmra.mxu1 %v2555_v50 }
  0xc3   : > { %759 = vmatprep.mubr.bf16.mxu0 %v2998_v3  ;;  %890 = vmatprep.mubr.bf16.mxu1 %v2998_v3 }
  0xc4   : > { %2234 = vmatpush3.bf16.msra.mxu0 %v2581_v55  ;;  %2310 = vmatpush3.bf16.msra.mxu1 %v2582_v56 }
  0xc5   : > { %2235 = vmatprep.subr.bf16.mxu0 %v2583_v0  ;;  %2311 = vmatprep.subr.bf16.mxu1 %v2584_v1 }
  0xc8   : > { %2236 = vmatpush3.bf16.msra.mxu0 %v2585_v2  ;;  %2312 = vmatpush3.bf16.msra.mxu1 %v2586_v4 }
  0xc9   : > { %2237 = vmatprep.subr.bf16.mxu0 %v2587_v5  ;;  %2313 = vmatprep.subr.bf16.mxu1 %v2588_v6 }
  0xca   : > { %760 = vmatmul.mubr.bf16.gmra.mxu0 %v2556_v57  ;;  %891 = vmatmul.mubr.bf16.gmra.mxu1 %v2556_v57 }
  0xcb   : > { %769 = vmatprep.mubr.bf16.mxu0 %v2998_v3  ;;  %900 = vmatprep.mubr.bf16.mxu1 %v2998_v3 }
  0xcc   : > { %2238 = vmatpush3.bf16.msra.mxu0 %v2589_v7  ;;  %2314 = vmatpush3.bf16.msra.mxu1 %v2590_v8 }
  0xcd   : > { %2315 = vmatprep.subr.bf16.mxu1 %v2592_v9 }
  0xd0   : > { %2316 = vmatpush3.bf16.msra.mxu1 %v2594_v11 }
  0xd2   : > { %770 = vmatmul.mubr.bf16.gmra.mxu0 %v2557_v58  ;;  %901 = vmatmul.mubr.bf16.gmra.mxu1 %v2557_v58 }
  0xd3   : > { %779 = vmatprep.mubr.bf16.mxu0 %v2998_v3  ;;  %910 = vmatprep.mubr.bf16.mxu1 %v2998_v3 }
  0xda   : > { %780 = vmatmul.mubr.bf16.gmra.mxu0 %v2558_v59  ;;  %911 = vmatmul.mubr.bf16.gmra.mxu1 %v2558_v59 }
  0xdb   : > { %789 = vmatprep.mubr.bf16.mxu0 %v2998_v3  ;;  %920 = vmatprep.mubr.bf16.mxu1 %v2998_v3 }
  0xe2   : > { %790 = vmatmul.mubr.bf16.gmra.mxu0 %v2559_v60  ;;  %921 = vmatmul.mubr.bf16.gmra.mxu1 %v2559_v60 }
  0xe3   : > { %799 = vmatprep.mubr.bf16.mxu0 %v2998_v3  ;;  %930 = vmatprep.mubr.bf16.mxu1 %v2998_v3 }
  0xea   : > { %800 = vmatmul.mubr.bf16.gmra.mxu0 %v2560_v61  ;;  %931 = vmatmul.mubr.bf16.gmra.mxu1 %v2560_v61 }
  0xeb   : > { %809 = vmatprep.mubr.bf16.mxu0 %v2998_v3  ;;  %940 = vmatprep.mubr.bf16.mxu1 %v2998_v3 }
  0xf2   : > { %810 = vmatmul.mubr.bf16.gmra.mxu0 %v2561_v62  ;;  %941 = vmatmul.mubr.bf16.gmra.mxu1 %v2561_v62 }
  0xf3   : > { %819 = vmatprep.mubr.bf16.mxu0 %v2998_v3  ;;  %950 = vmatprep.mubr.bf16.mxu1 %v2998_v3  ;;  %v2591_v3 = vld [vmem:[%s3267_s12 + $0x40] sm:$0xff]  }
  0xf4   : > { %2239 = vmatprep.subr.bf16.mxu0 %v2591_v3 }
  0xf5   : > { %2240 = vmatpush3.bf16.msra.mxu0 %v2593_v10 }
  0xfa   : > { %820 = vmatmul.mubr.bf16.gmra.mxu0 %v2562_v63  ;;  %951 = vmatmul.mubr.bf16.gmra.mxu1 %v2562_v63 }
 0x172   : > { %v731_v21 = vpop.f32.mrf.mxu0  ;;  %v862_v22 = vpop.f32.mrf.mxu1 }
 0x173   : > { %v732_v24 = vadd.f32 %v731_v21, %v3375_v18  ;;  %v863_v28 = vadd.f32 %v862_v22, %v3377_v20 }
 0x174   : > { %v733_v25 = vpop.f32.mrf.mxu0  ;;  %v864_v27 = vpop.f32.mrf.mxu1 }
 0x175   : > { %v734_v31 = vadd.f32 %v733_v25, %v3379_v23  ;;  %v1035_v33 = vmul.f32 0.70710677, %v732_v24  ;;  %v865_v34 = vadd.f32 %v864_v27, %v3382_v26  ;;  %v1037_v37 = vmul.f32 0.70710677, %v863_v28 }
 0x176   : > { %v735_v29 = vpop.f32.mrf.mxu0  ;;  %v866_v30 = vpop.f32.mrf.mxu1  ;;  %v959_v3 = vmul.f32 0.5, %v732_v24  ;;  %v3402_v10 = vmul.f32 0.5, %v863_v28 }
 0x177   : > { %v736_v32 = vadd.f32 %v735_v29, %v3375_v18  ;;  %v867_v38 = vadd.f32 %v866_v30, %v3377_v20  ;;  %v1036_v42 = vmul.f32 0.70710677, %v734_v31  ;;  %2595 = verf.f32 %v1035_v33 }
 0x178   : > { %v737_v35 = vpop.f32.mrf.mxu0  ;;  %v868_v36 = vpop.f32.mrf.mxu1  ;;  %v1038_v43 = vmul.f32 0.70710677, %v865_v34  ;;  %2597 = verf.f32 %v1037_v37  ;;  %v3404_v11 = vmul.f32 0.5, %v734_v31  ;;  %v3411_v16 = vmul.f32 0.5, %v865_v34 }
 0x179   : > { %v1039_v39 = vmul.f32 0.70710677, %v736_v32  ;;  %v738_v44 = vadd.f32 %v737_v35, %v3379_v23  ;;  %v1041_v47 = vmul.f32 0.70710677, %v867_v38  ;;  %v869_v48 = vadd.f32 %v868_v36, %v3382_v26 }
 0x17a   : > { %v741_v40 = vpop.f32.mrf.mxu0  ;;  %v872_v41 = vpop.f32.mrf.mxu1  ;;  %v963_v17 = vmul.f32 0.5, %v736_v32  ;;  %v3413_v19 = vmul.f32 0.5, %v867_v38 }
 0x17b   : > { %2599 = verf.f32 %v1039_v39  ;;  %v742_v49 = vadd.f32 %v741_v40, %v3375_v18  ;;  %v873_v52 = vadd.f32 %v872_v41, %v3377_v20  ;;  %v1040_v53 = vmul.f32 0.70710677, %v738_v44 }
 0x17c   : > { %v743_v45 = vpop.f32.mrf.mxu0  ;;  %v874_v46 = vpop.f32.mrf.mxu1  ;;  %2601 = verf.f32 %v1036_v42  ;;  %v1042_v57 = vmul.f32 0.70710677, %v869_v48  ;;  %v3415_v22 = vmul.f32 0.5, %v738_v44  ;;  %v3422_v30 = vmul.f32 0.5, %v869_v48 }
 0x17d   : > { %2603 = verf.f32 %v1038_v43  ;;  %v744_v54 = vadd.f32 %v743_v45, %v3379_v23  ;;  %v875_v58 = vadd.f32 %v874_v46, %v3382_v26  ;;  %v1043_v59 = vmul.f32 0.70710677, %v742_v49 }
 0x17e   : > { %v745_v50 = vpop.f32.mrf.mxu0  ;;  %v876_v51 = vpop.f32.mrf.mxu1  ;;  %2605 = verf.f32 %v1041_v47  ;;  %v1045_v63 = vmul.f32 0.70710677, %v873_v52  ;;  %v3424_v31 = vmul.f32 0.5, %v742_v49  ;;  %v3427_v35 = vmul.f32 0.5, %v873_v52 }
 0x17f   : > { %v746_v60 = vadd.f32 %v745_v50, %v3375_v18  ;;  %2607 = verf.f32 %v1040_v53  ;;  %v1044_v0 = vmul.f32 0.70710677, %v744_v54  ;;  %v1046_v4 = vmul.f32 0.70710677, %v875_v58 }
 0x180   : > { %v747_v55 = vpop.f32.mrf.mxu0  ;;  %v878_v56 = vpop.f32.mrf.mxu1  ;;  %2609 = verf.f32 %v1042_v57  ;;  %v877_v6 = vadd.f32 %v876_v51, %v3377_v20  ;;  %v3429_v36 = vmul.f32 0.5, %v744_v54  ;;  %v3431_v37 = vmul.f32 0.5, %v875_v58 }
 0x181   : > { %2611 = verf.f32 %v1043_v59  ;;  %v1047_v5 = vmul.f32 0.70710677, %v746_v60  ;;  %v748_v9 = vadd.f32 %v747_v55, %v3379_v23  ;;  %v879_v12 = vadd.f32 %v878_v56, %v3382_v26 }
 0x182   : > { %v751_v61 = vpop.f32.mrf.mxu0  ;;  %v882_v62 = vpop.f32.mrf.mxu1  ;;  %2613 = verf.f32 %v1045_v63  ;;  %v1049_v24 = vmul.f32 0.70710677, %v877_v6  ;;  %v3437_v43 = vmul.f32 0.5, %v746_v60  ;;  %v3439_v44 = vmul.f32 0.5, %v877_v6 }
 0x183   : > { %2615 = verf.f32 %v1044_v0  ;;  %v752_v25 = vadd.f32 %v751_v61, %v3375_v18  ;;  %v1048_v32 = vmul.f32 0.70710677, %v748_v9  ;;  %v883_v33 = vadd.f32 %v882_v62, %v3377_v20 }
 0x184   : > { %v753_v1 = vpop.f32.mrf.mxu0  ;;  %v884_v2 = vpop.f32.mrf.mxu1  ;;  %2617 = verf.f32 %v1046_v4  ;;  %v1050_v38 = vmul.f32 0.70710677, %v879_v12  ;;  %v3442_v48 = vmul.f32 0.5, %v748_v9  ;;  %v3449_v57 = vmul.f32 0.5, %v879_v12 }
 0x185   : > { %v2596_v15 = vpop.eup %2595  ;;  %2619 = verf.f32 %v1047_v5  ;;  %v754_v45 = vadd.f32 %v753_v1, %v3379_v23  ;;  %v1051_v49 = vmul.f32 0.70710677, %v752_v25  ;;  %v1053_v53 = vmul.f32 0.70710677, %v883_v33 }
 0x186   : > { %v3397_v7 = vpop.f32.mrf.mxu0  ;;  %v3399_v8 = vpop.f32.mrf.mxu1  ;;  %v1187_v42 = vadd.f32 1.0, %v2596_v15  ;;  %2621 = verf.f32 %v1049_v24  ;;  %v885_v54 = vadd.f32 %v884_v2, %v3382_v26  ;;  %v3457_v63 = vmul.f32 0.5, %v752_v25 }
 0x187   : > { %v2598_v21 = vpop.eup %2597  ;;  %2623 = verf.f32 %v1048_v32  ;;  %v1052_v0 = vmul.f32 0.70710677, %v754_v45  ;;  %v3461_v2 = vmul.f32 0.5, %v883_v33  ;;  %v756_v5 = vadd.f32 %v3397_v7, %v3375_v18 }
 0x188   : > { %v3407_v13 = vpop.f32.mrf.mxu0  ;;  %v3409_v14 = vpop.f32.mrf.mxu1  ;;  %v1189_v52 = vadd.f32 1.0, %v2598_v21  ;;  %2625 = verf.f32 %v1050_v38  ;;  %v3455_v61 = vmul.f32 %v1187_v42, %v959_v3  ;;  %v1054_v15 = vmul.f32 0.70710677, %v885_v54 }
 0x189   : > { %v2600_v29 = vpop.eup %2599  ;;  %2627 = verf.f32 %v1051_v49  ;;  %v3480_v7 = vmul.f32 0.5, %v754_v45  ;;  %v3495_v42 = vmul.f32 0.5, %v756_v5 }
 0x18a   : > { %v3418_v27 = vpop.f32.mrf.mxu0  ;;  %v3420_v28 = vpop.f32.mrf.mxu1  ;;  %v1191_v47 = vadd.f32 1.0, %v2600_v29  ;;  %v3470_v3 = vmul.f32 %v1189_v52, %v3402_v10  ;;  %2629 = verf.f32 %v1053_v53  ;;  %v758_v29 = vadd.f32 %v3407_v13, %v3379_v23 }
 0x18b   : > { %v2602_v34 = vpop.eup %2601  ;;  %2631 = verf.f32 %v1052_v0  ;;  %v1055_v13 = vmul.f32 0.70710677, %v756_v5  ;;  %v889_v52 = vadd.f32 %v3409_v14, %v3382_v26  ;;  %v3516_v14 = vadd.f32 %v3420_v28, %v3377_v20 }
 0x18c   : > { %v3433_v39 = vpop.f32.mrf.mxu0  ;;  %v3435_v40 = vpop.f32.mrf.mxu1  ;;  %v1188_v55 = vadd.f32 1.0, %v2602_v34  ;;  %v3459_v4 = vmul.f32 %v1191_v47, %v963_v17  ;;  %v887_v17 = vadd.f32 %v3399_v8, %v3377_v20  ;;  %2633 = verf.f32 %v1054_v15 }
 0x18d   : > { %v2604_v41 = vpop.eup %2603  ;;  %2635 = verf.f32 %v1055_v13  ;;  %v3532_v28 = vadd.f32 %v3435_v40, %v3382_v26 }
 0x18e   : > { %v2606_v46 = vpop.eup %2605  ;;  %v3444_v50 = vpop.f32.mrf.mxu0  ;;  %v1190_v56 = vadd.f32 1.0, %v2604_v41  ;;  %v3475_v24 = vmul.f32 %v1188_v55, %v3404_v11  ;;  %v3491_v11 = vmul.f32 0.5, %v885_v54  ;;  %v1056_v55 = vmul.f32 0.70710677, %v758_v29 }
 0x18f   : > { %v3446_v51 = vpop.f32.mrf.mxu1  ;;  %v2608_v60 = vpop.eup %2607  ;;  %v1193_v62 = vadd.f32 1.0, %v2606_v46  ;;  %v3548_v40 = vmul.f32 0.5, %v887_v17 }
 0x190   : > { %v3451_v58 = vpop.f32.mrf.mxu0  ;;  %v2610_v1 = vpop.eup %2609  ;;  %v3478_v25 = vmul.f32 %v1190_v56, %v3411_v16  ;;  %v1192_v8 = vadd.f32 1.0, %v2608_v60  ;;  %v3505_v56 = vadd.f32 %v3418_v27, %v3375_v18  ;;  %v3521_v27 = vadd.f32 %v3433_v39, %v3379_v23 }
 0x191   : > { %v3453_v59 = vpop.f32.mrf.mxu1  ;;  %v2612_v12 = vpop.eup %2611  ;;  %v3489_v34 = vmul.f32 %v1193_v62, %v3413_v19  ;;  %v1194_v41 = vadd.f32 1.0, %v2610_v1  ;;  %v1057_v19 = vmul.f32 0.70710677, %v887_v17 }
 0x192   : > { %v3465_v6 = vpop.f32.mrf.mxu0  ;;  %v2614_v21 = vpop.eup %2613  ;;  %v1195_v49 = vadd.f32 1.0, %v2612_v12  ;;  %v1268_v1 = vmul.f32 %v1192_v8, %v3415_v22  ;;  %v1058_v8 = vmul.f32 0.70710677, %v889_v52 }
 0x193   : > { %v3467_v9 = vpop.f32.mrf.mxu1  ;;  %v2616_v33 = vpop.eup %2615  ;;  %v1197_v53 = vadd.f32 1.0, %v2614_v21  ;;  %v1270_v12 = vmul.f32 %v1194_v41, %v3422_v30  ;;  %2637 = verf.f32 %v1057_v19  ;;  %v1059_v41 = vmul.f32 0.70710677, %v3505_v56 }
 0x194   : > { %v3484_v32 = vpop.f32.mrf.mxu0  ;;  %v2618_v38 = vpop.eup %2617  ;;  %v1196_v54 = vadd.f32 1.0, %v2616_v33  ;;  %v3528_v22 = vmul.f32 %v1195_v49, %v3424_v31  ;;  %2639 = verf.f32 %v1056_v55  ;;  %v1061_v19 = vmul.f32 0.70710677, %v3516_v14 }
 0x195   : > { %v3486_v10 = vpop.f32.mrf.mxu1  ;;  %v2620_v47 = vpop.eup %2619  ;;  %v1198_v5 = vadd.f32 1.0, %v2618_v38  ;;  %v3535_v38 = vmul.f32 %v1197_v53, %v3427_v35  ;;  %v766_v35 = vadd.f32 %v3444_v50, %v3375_v18  ;;  %v1060_v55 = vmul.f32 0.70710677, %v3521_v27 }
 0x196   : > { %v3497_v45 = vpop.f32.mrf.mxu0  ;;  %v1199_v15 = vadd.f32 1.0, %v2620_v47  ;;  %v2622_v0 = vpop.eup %2621  ;;  %v3538_v39 = vmul.f32 %v1196_v54, %v3429_v36  ;;  %v3556_v54 = vmul.f32 0.5, %v758_v29  ;;  %2641 = verf.f32 %v1058_v8 }
 0x197   : > { %v3499_v46 = vpop.f32.mrf.mxu1  ;;  %v2624_v30 = vpop.eup %2623  ;;  %v3546_v49 = vmul.f32 %v1198_v5, %v3431_v37  ;;  %v1201_v53 = vadd.f32 1.0, %v2622_v0  ;;  %v1062_v5 = vmul.f32 0.70710677, %v3532_v28  ;;  %2643 = verf.f32 %v1059_v41 }
 0x198   : > { %v3507_v60 = vpop.f32.mrf.mxu0  ;;  %v2626_v47 = vpop.eup %2625  ;;  %v3554_v36 = vmul.f32 %v1199_v15, %v3437_v43  ;;  %v1200_v17 = vadd.f32 1.0, %v2624_v30  ;;  %v897_v43 = vadd.f32 %v3446_v51, %v3377_v20  ;;  %v1361_v29 = vpack.c.bf16 %v1270_v12, %v3478_v25 }
 0x199   : > { %v3509_v62 = vpop.f32.mrf.mxu1  ;;  %v2628_v37 = vpop.eup %2627  ;;  %2645 = verf.f32 %v1061_v19  ;;  %v1063_v8 = vmul.f32 0.70710677, %v766_v35  ;;  %v3576_v30 = vadd.f32 %v3451_v58, %v3379_v23  ;;  %v3583_v25 = vadd.f32 %v3453_v59, %v3382_v26 }
 0x19a   : > { %v3523_v21 = vpop.f32.mrf.mxu0  ;;  %v2630_v50 = vpop.eup %2629  ;;  %v1203_v51 = vadd.f32 1.0, %v2628_v37  ;;  %2647 = verf.f32 %v1060_v55  ;;  %1798 = vmatprep.mubr.bf16.mxu1 %v1361_v29  ;;  %v1276_v41 = vmul.f32 %v1200_v17, %v3442_v48  ;;  %v4182_v59 = vpack.c.bf16 %v3489_v34, %v3470_v3 }
 0x19b   : > { %v3525_v33 = vpop.f32.mrf.mxu1  ;;  %2649 = verf.f32 %v1062_v5  ;;  %v1064_v3 = vmul.f32 0.70710677, %v3576_v30  ;;  %v3613_v34 = vadd.f32 %v3484_v32, %v3379_v23 }
 0x19c   : > { %4177 = vst [vmem:[#allocation27_spill] sm:$0xff] %v3525_v33  ;;  %v3541_v13 = vpop.f32.mrf.mxu0  ;;  %v1202_v33 = vadd.f32 1.0, %v2626_v47  ;;  %1799 = vmatmul.mubr.bf16.vlgmr.msra.gmra.mxu1 %v4182_v59  ;;  %2651 = verf.f32 %v1063_v8  ;;  %v3635_v8 = vmul.f32 0.5, %v766_v35  ;;  %v776_v35 = vadd.f32 %v3497_v45, %v3375_v18 }
 0x19d   : > { %4178 = vst [vmem:[#allocation28_spill] sm:$0xff] %v3541_v13  ;;  %v3543_v31 = vpop.f32.mrf.mxu1  ;;  %v1359_v13 = vpack.c.bf16 %v1268_v1, %v3475_v24  ;;  %v2632_v24 = vpop.eup %2631  ;;  %v3579_v1 = vmul.f32 %v1201_v53, %v3439_v44  ;;  %v772_v44 = vadd.f32 %v3465_v6, %v3375_v18  ;;  %v3604_v53 = vadd.f32 %v3467_v9, %v3377_v20 }
 0x19e   : > { %4179 = vst [vmem:[#allocation29_spill] sm:$0xff] %v3543_v31  ;;  %v3559_v16 = vpop.f32.mrf.mxu0  ;;  %v2634_v47 = vpop.eup %2633  ;;  %v1278_v19 = vmul.f32 %v1202_v33, %v3449_v57  ;;  %v1204_v6 = vadd.f32 1.0, %v2632_v24  ;;  %v3616_v57 = vmul.f32 %v1203_v51, %v3457_v63  ;;  %v3622_v9 = vmul.f32 0.5, %v3521_v27 }
 0x19f   : > { %v3561_v31 = vpop.f32.mrf.mxu1  ;;  %1686 = vmatprep.mubr.bf16.mxu0 %v1359_v13  ;;  %v1205_v13 = vadd.f32 1.0, %v2630_v50  ;;  %v1066_v33 = vmul.f32 0.70710677, %v3583_v25  ;;  %v2636_v5 = vpop.eup %2635  ;;  %v1206_v32 = vadd.f32 1.0, %v2634_v47  ;;  %v3633_v63 = vmul.f32 0.5, %v3532_v28 }
 0x1a0   : > { %4180 = vst [vmem:[#allocation30_spill] sm:$0xff] %v3561_v31  ;;  %v3568_v0 = vpop.f32.mrf.mxu0  ;;  %v3572_v31 = vmul.f32 0.5, %v889_v52  ;;  %v4181_v52 = vpack.c.bf16 %v3459_v4, %v3455_v61  ;;  %v3600_v61 = vmul.f32 0.5, %v3505_v56  ;;  %v1065_v4 = vmul.f32 0.70710677, %v897_v43 }
 0x1a1   : > { %v3570_v15 = vpop.f32.mrf.mxu1  ;;  %v3619_v56 = vmul.f32 0.5, %v3516_v14  ;;  %v3630_v50 = vmul.f32 %v1205_v13, %v3461_v2  ;;  %v1067_v29 = vmul.f32 0.70710677, %v772_v44  ;;  %v2638_v14 = vpop.eup %2637  ;;  %v1069_v27 = vmul.f32 0.70710677, %v3604_v53 }
 0x1a2   : > { %1687 = vmatmul.mubr.bf16.vlgmr.msra.gmra.mxu0 %v4181_v52  ;;  %v3588_v12 = vpop.f32.mrf.mxu0  ;;  %2653 = verf.f32 %v1065_v4  ;;  %v3640_v24 = vadd.f32 %v3486_v10, %v3382_v26  ;;  %v2640_v2 = vpop.eup %2639  ;;  %v3647_v13 = vmul.f32 %v1204_v6, %v3480_v7  ;;  %v1068_v28 = vmul.f32 0.70710677, %v3613_v34 }
 0x1a3   : > { %v3590_v58 = vpop.f32.mrf.mxu1  ;;  %2655 = verf.f32 %v1064_v3  ;;  %v1207_v59 = vadd.f32 1.0, %v2636_v5  ;;  %v3652_v47 = vmul.f32 0.5, %v897_v43  ;;  %v3656_v10 = vadd.f32 %v3499_v46, %v3377_v20  ;;  %v2642_v3 = vpop.eup %2641 }
 0x1a4   : > { %v3606_v48 = vpop.f32.mrf.mxu0  ;;  %2657 = verf.f32 %v1066_v33  ;;  %v1209_v7 = vadd.f32 1.0, %v2638_v14  ;;  %v3664_v6 = vadd.f32 %v3507_v60, %v3379_v23  ;;  %v1363_v45 = vpack.c.bf16 %v1276_v41, %v3538_v39 }
 0x1a5   : > { %v3608_v55 = vpop.f32.mrf.mxu1  ;;  %2659 = verf.f32 %v1067_v29  ;;  %v1208_v43 = vadd.f32 1.0, %v2640_v2  ;;  %v1070_v33 = vmul.f32 0.70710677, %v3640_v24  ;;  %v1365_v46 = vpack.c.bf16 %v1278_v19, %v3546_v49 }
 0x1a6   : > { %v3625_v37 = vpop.f32.mrf.mxu0  ;;  %2661 = verf.f32 %v1069_v27  ;;  %v3674_v29 = vmul.f32 %v1206_v32, %v3491_v11  ;;  %v3677_v60 = vmul.f32 0.5, %v3576_v30  ;;  %v1071_v39 = vmul.f32 0.70710677, %v776_v35  ;;  %1694 = vmatprep.mubr.bf16.mxu0 %v1363_v45 }
 0x1a7   : > { %v3627_v17 = vpop.f32.mrf.mxu1  ;;  %2663 = verf.f32 %v1068_v28  ;;  %v3680_v14 = vmul.f32 %v1207_v59, %v3495_v42  ;;  %v3683_v49 = vmul.f32 0.5, %v3583_v25  ;;  %v3685_v19 = vmul.f32 0.5, %v772_v44  ;;  %1806 = vmatprep.mubr.bf16.mxu1 %v1365_v46 }
 0x1a8   : > { %4183 = vst [vmem:[#allocation31_spill] sm:$0xff] %v3627_v17  ;;  %v3642_v51 = vpop.f32.mrf.mxu0  ;;  %v1073_v27 = vmul.f32 0.70710677, %v3656_v10  ;;  %v3693_v2 = vmul.f32 %v1209_v7, %v3548_v40  ;;  %v1210_v28 = vadd.f32 1.0, %v2642_v3  ;;  %v3696_v42 = vmul.f32 0.5, %v3604_v53 }
 0x1a9   : > { %v3644_v52 = vpop.f32.mrf.mxu1  ;;  %v1072_v25 = vmul.f32 0.70710677, %v3664_v6  ;;  %v1284_v44 = vmul.f32 %v1208_v43, %v3556_v54  ;;  %2665 = verf.f32 %v1070_v33  ;;  %v909_v45 = vadd.f32 %v3509_v62, %v3382_v26  ;;  %v4189_v62 = vld [vmem:[#allocation27_spill] sm:$0xff] }
 0x1aa   : > { %v3658_v4 = vpop.f32.mrf.mxu0  ;;  %v1362_v46 = vpack.c.bf16 %v3554_v36, %v3528_v22  ;;  %2667 = verf.f32 %v1071_v39  ;;  %v782_v53 = vadd.f32 %v3523_v21, %v3375_v18  ;;  %v1364_v3 = vpack.c.bf16 %v3579_v1, %v3535_v38 }
 0x1ab   : > { %4184 = vst [vmem:[#allocation32_spill] sm:$0xff] %v3658_v4  ;;  %v3660_v17 = vpop.f32.mrf.mxu1  ;;  %2669 = verf.f32 %v1073_v27  ;;  %v3720_v21 = vmul.f32 0.5, %v3613_v34  ;;  %v3723_v38 = vmul.f32 0.5, %v3640_v24  ;;  %v3725_v1 = vmul.f32 0.5, %v776_v35  ;;  %v4192_v27 = vld [vmem:[#allocation28_spill] sm:$0xff] }
 0x1ac   : > { %4185 = vst [vmem:[#allocation33_spill] sm:$0xff] %v3660_v17  ;;  %v3669_v5 = vpop.f32.mrf.mxu0  ;;  %v2644_v17 = vpop.eup %2643  ;;  %1695 = vmatmul.mubr.bf16.gmra.mxu0 %v1362_v46  ;;  %2671 = verf.f32 %v1072_v25  ;;  %1807 = vmatmul.mubr.bf16.gmra.mxu1 %v1364_v3  ;;  %v3737_v25 = vmul.f32 0.5, %v3656_v10  ;;  %v1075_v24 = vmul.f32 0.70710677, %v782_v53 }
 0x1ad   : > { %v3671_v4 = vpop.f32.mrf.mxu1  ;;  %v2646_v41 = vpop.eup %2645  ;;  %v1211_v7 = vadd.f32 1.0, %v2644_v17  ;;  %v1286_v17 = vmul.f32 %v1210_v28, %v3572_v31 }
 0x1ae   : > { %v3688_v11 = vpop.f32.mrf.mxu0  ;;  %v2648_v30 = vpop.eup %2647  ;;  %v1213_v43 = vadd.f32 1.0, %v2646_v41  ;;  %v1074_v41 = vmul.f32 0.70710677, %v909_v45 }
 0x1af   : > { %4186 = vst [vmem:[#allocation34_spill] sm:$0xff] %v3688_v11  ;;  %v3690_v32 = vpop.f32.mrf.mxu1  ;;  %v2650_v59 = vpop.eup %2649  ;;  %v1212_v33 = vadd.f32 1.0, %v2648_v30  ;;  %v913_v11 = vadd.f32 %v4189_v62, %v3377_v20  ;;  %v784_v30 = vadd.f32 %v4192_v27, %v3379_v23  ;;  %v3734_v28 = vmul.f32 %v1211_v7, %v3600_v61 }
 0x1b0   : > { %4187 = vst [vmem:[#allocation35_spill] sm:$0xff] %v3690_v32  ;;  %v3704_v32 = vpop.f32.mrf.mxu0  ;;  %v2652_v54 = vpop.eup %2651  ;;  %v1214_v39 = vadd.f32 1.0, %v2650_v59  ;;  %v3740_v35 = vmul.f32 %v1213_v43, %v3619_v56  ;;  %v3746_v27 = vmul.f32 0.5, %v3664_v6  ;;  %v4197_v56 = vld [vmem:[#allocation29_spill] sm:$0xff]  ;;  %2673 = verf.f32 %v1074_v41 }
 0x1b1   : > { %v3706_v40 = vpop.f32.mrf.mxu1  ;;  %v2654_v31 = vpop.eup %2653  ;;  %v1215_v34 = vadd.f32 1.0, %v2652_v54  ;;  %v3743_v3 = vmul.f32 %v1212_v33, %v3622_v9  ;;  %v3755_v54 = vmul.f32 0.5, %v909_v45  ;;  %v915_v43 = vadd.f32 %v4197_v56, %v3382_v26 }
 0x1b2   : > { %4188 = vst [vmem:[#allocation36_spill] sm:$0xff] %v3706_v40  ;;  %v3714_v22 = vpop.f32.mrf.mxu0  ;;  %v2656_v59 = vpop.eup %2655  ;;  %v3753_v10 = vmul.f32 %v1214_v39, %v3633_v63  ;;  %v1367_v9 = vpack.c.bf16 %v1284_v44, %v3647_v13  ;;  %v3760_v6 = vmul.f32 0.5, %v782_v53  ;;  %2675 = verf.f32 %v1075_v24  ;;  %v4199_v53 = vld [vmem:[#allocation30_spill] sm:$0xff] }
 0x1b3   : > { %4190 = vst [vmem:[#allocation27_spill] sm:$0xff] %v3714_v22  ;;  %v3716_v36 = vpop.f32.mrf.mxu1  ;;  %v2658_v7 = vpop.eup %2657  ;;  %v1076_v22 = vmul.f32 0.70710677, %v784_v30  ;;  %v3767_v63 = vmul.f32 %v1215_v34, %v3635_v8  ;;  %v1216_v45 = vadd.f32 1.0, %v2656_v59  ;;  %v786_v39 = vadd.f32 %v3559_v16, %v3375_v18 }
 0x1b4   : > { %4191 = vst [vmem:[#allocation37_spill] sm:$0xff] %v3716_v36  ;;  %v3729_v46 = vpop.f32.mrf.mxu0  ;;  %v1077_v36 = vmul.f32 0.70710677, %v913_v11  ;;  %v2660_v33 = vpop.eup %2659  ;;  %1702 = vmatprep.mubr.bf16.mxu0 %v1367_v9  ;;  %v1218_v44 = vadd.f32 1.0, %v2658_v7  ;;  %v3771_v41 = vmul.f32 0.5, %v913_v11  ;;  %v788_v24 = vadd.f32 %v3568_v0, %v3379_v23 }
 0x1b5   : > { %4193 = vst [vmem:[#allocation28_spill] sm:$0xff] %v3729_v46  ;;  %v3731_v62 = vpop.f32.mrf.mxu1  ;;  %v1217_v46 = vadd.f32 1.0, %v2654_v31  ;;  %v2662_v40 = vpop.eup %2661  ;;  %v917_v31 = vadd.f32 %v4199_v53, %v3377_v20  ;;  %v1219_v8 = vadd.f32 1.0, %v2660_v33  ;;  %v1078_v34 = vmul.f32 0.70710677, %v915_v43 }
 0x1b6   : > { %4194 = vst [vmem:[#allocation38_spill] sm:$0xff] %v3731_v62  ;;  %v3748_v62 = vpop.f32.mrf.mxu0  ;;  %v2664_v13 = vpop.eup %2663  ;;  %2677 = verf.f32 %v1077_v36  ;;  %v1369_v16 = vpack.c.bf16 %v1286_v17, %v3674_v29  ;;  %v1221_v11 = vadd.f32 1.0, %v2662_v40  ;;  %v1366_v36 = vpack.c.bf16 %v3680_v14, %v3616_v57 }
 0x1b7   : > { %4195 = vst [vmem:[#allocation39_spill] sm:$0xff] %v3748_v62  ;;  %v3750_v61 = vpop.f32.mrf.mxu1  ;;  %v3783_v59 = vmul.f32 %v1217_v46, %v3652_v47  ;;  %2679 = verf.f32 %v1076_v22  ;;  %v2666_v53 = vpop.eup %2665  ;;  %v1220_v33 = vadd.f32 1.0, %v2664_v13  ;;  %v919_v0 = vadd.f32 %v3570_v15, %v3382_v26 }
 0x1b8   : > { %4196 = vst [vmem:[#allocation40_spill] sm:$0xff] %v3750_v61  ;;  %v3762_v62 = vpop.f32.mrf.mxu0  ;;  %1814 = vmatprep.mubr.bf16.mxu1 %v1369_v16  ;;  %v1368_v47 = vpack.c.bf16 %v3693_v2, %v3630_v50  ;;  %v2668_v29 = vpop.eup %2667  ;;  %v1292_v40 = vmul.f32 %v1216_v45, %v3677_v60  ;;  %v1294_v22 = vmul.f32 %v1218_v44, %v3683_v49  ;;  %v3797_v57 = vmul.f32 0.5, %v784_v30 }
 0x1b9   : > { %v3764_v61 = vpop.f32.mrf.mxu1  ;;  %v1081_v14 = vmul.f32 0.70710677, %v917_v31  ;;  %1703 = vmatmul.mubr.bf16.gmra.mxu0 %v1366_v36  ;;  %v2670_v13 = vpop.eup %2669  ;;  %v3802_v15 = vmul.f32 0.5, %v915_v43  ;;  %2681 = verf.f32 %v1078_v34  ;;  %v1080_v16 = vmul.f32 0.70710677, %v788_v24 }
 0x1ba   : > { %4198 = vst [vmem:[#allocation29_spill] sm:$0xff] %v3764_v61  ;;  %v3775_v56 = vpop.f32.mrf.mxu0  ;;  %1815 = vmatmul.mubr.bf16.gmra.mxu1 %v1368_v47  ;;  %v2672_v50 = vpop.eup %2671  ;;  %v3805_v60 = vmul.f32 %v1221_v11, %v3696_v42  ;;  %v1222_v49 = vadd.f32 1.0, %v2666_v53  ;;  %v3807_v2 = vmul.f32 0.5, %v786_v39  ;;  %v792_v30 = vadd.f32 %v3588_v12, %v3375_v18 }
 0x1bb   : > { %v3777_v61 = vpop.f32.mrf.mxu1  ;;  %v1082_v43 = vmul.f32 0.70710677, %v919_v0  ;;  %v1223_v34 = vadd.f32 1.0, %v2668_v29  ;;  %v1225_v36 = vadd.f32 1.0, %v2670_v13  ;;  %v794_v42 = vadd.f32 %v3606_v48, %v3379_v23 }
 0x1bc   : > { %4200 = vst [vmem:[#allocation30_spill] sm:$0xff] %v3777_v61  ;;  %v3787_v7 = vpop.f32.mrf.mxu0  ;;  %v1079_v61 = vmul.f32 0.70710677, %v786_v39  ;;  %v1224_v39 = vadd.f32 1.0, %v2672_v50  ;;  %v925_v12 = vadd.f32 %v3608_v55, %v3382_v26  ;;  %v1371_v11 = vpack.c.bf16 %v1292_v40, %v3743_v3 }
 0x1bd   : > { %v3789_v9 = vpop.f32.mrf.mxu1  ;;  %v1083_v53 = vmul.f32 0.70710677, %v792_v30  ;;  %v3830_v47 = vmul.f32 0.5, %v788_v24  ;;  %v3832_v48 = vmul.f32 0.5, %v919_v0  ;;  %v3835_v3 = vmul.f32 %v1223_v34, %v3725_v1  ;;  %v4202_v1 = vld [vmem:[#allocation31_spill] sm:$0xff] }
 0x1be   : > { %4201 = vst [vmem:[#allocation41_spill] sm:$0xff] %v3789_v9  ;;  %v825_v17 = vpop.f32.mrf.mxu0  ;;  %v3800_v9 = vmul.f32 %v1219_v8, %v3685_v19  ;;  %v3812_v19 = vmul.f32 %v1220_v33, %v3720_v21  ;;  %2683 = verf.f32 %v1079_v61  ;;  %v923_v8 = vadd.f32 %v3590_v58, %v3377_v20  ;;  %v2674_v33 = vpop.eup %2673  ;;  %1710 = vmatprep.mubr.bf16.mxu0 %v1371_v11 }
 0x1bf   : > { %v956_v46 = vpop.f32.mrf.mxu1  ;;  %2685 = verf.f32 %v1081_v14  ;;  %v3822_v21 = vmul.f32 %v1222_v49, %v3723_v38  ;;  %v3824_v61 = vmul.f32 0.5, %v917_v31  ;;  %v3828_v58 = vadd.f32 %v3642_v51, %v3379_v23  ;;  %v2676_v55 = vpop.eup %2675 }
 0x1c0   : > { %v826_v45 = vpop.f32.mrf.mxu0  ;;  %2687 = verf.f32 %v1080_v16  ;;  %v1085_v29 = vmul.f32 0.70710677, %v923_v8  ;;  %v3838_v38 = vmul.f32 %v1225_v36, %v3737_v25  ;;  %v1084_v31 = vmul.f32 0.70710677, %v794_v42 }
 0x1c1   : > { %v957_v44 = vpop.f32.mrf.mxu1  ;;  %2689 = verf.f32 %v1082_v43  ;;  %v3842_v51 = vadd.f32 %v3644_v52, %v3382_v26  ;;  %v1300_v24 = vmul.f32 %v1224_v39, %v3746_v27  ;;  %v1086_v0 = vmul.f32 0.70710677, %v925_v12 }
 0x1c2   : > { %v796_v14 = vadd.f32 %v3625_v37, %v3375_v18  ;;  %v1373_v17 = vpack.c.bf16 %v1294_v22, %v3753_v10  ;;  %2691 = verf.f32 %v1083_v53  ;;  %v927_v46 = vadd.f32 %v4202_v1, %v3377_v20 }
 0x1c3   : > { %v2678_v40 = vpop.eup %2677  ;;  %v1088_v25 = vmul.f32 0.70710677, %v3828_v58  ;;  %v1370_v13 = vpack.c.bf16 %v3767_v63, %v3734_v28  ;;  %v1226_v16 = vadd.f32 1.0, %v2674_v33  ;;  %v1227_v50 = vadd.f32 1.0, %v2676_v55 }
 0x1c4   : > { %v2680_v52 = vpop.eup %2679  ;;  %v3853_v49 = vmul.f32 0.5, %v792_v30  ;;  %2693 = verf.f32 %v1085_v29  ;;  %1822 = vmatprep.mubr.bf16.mxu1 %v1373_v17  ;;  %v1229_v27 = vadd.f32 1.0, %v2678_v40  ;;  %v3855_v37 = vmul.f32 0.5, %v923_v8 }
 0x1c5   : > { %2695 = verf.f32 %v1084_v31  ;;  %v1090_v10 = vmul.f32 0.70710677, %v3842_v51  ;;  %1711 = vmatmul.mubr.bf16.gmra.mxu0 %v1370_v13  ;;  %v1087_v22 = vmul.f32 0.70710677, %v796_v14  ;;  %v1372_v45 = vpack.c.bf16 %v3783_v59, %v3740_v35  ;;  %v4204_v31 = vld [vmem:[#allocation33_spill] sm:$0xff] }
 0x1c6   : > { %2697 = verf.f32 %v1086_v0  ;;  %v3862_v28 = vadd.f32 %v3669_v5, %v3379_v23  ;;  %v2682_v63 = vpop.eup %2681  ;;  %v1228_v30 = vadd.f32 1.0, %v2680_v52  ;;  %v1089_v44 = vmul.f32 0.70710677, %v927_v46  ;;  %v4205_v0 = vld [vmem:[#allocation36_spill] sm:$0xff] }
 0x1c7   : > { %2699 = verf.f32 %v1088_v25  ;;  %v3866_v43 = vadd.f32 %v3671_v4, %v3382_v26  ;;  %v1302_v8 = vmul.f32 %v1226_v16, %v3755_v54  ;;  %v3870_v34 = vmul.f32 %v1227_v50, %v3760_v6  ;;  %1823 = vmatmul.mubr.bf16.gmra.mxu1 %v1372_v45  ;;  %v4203_v54 = vld [vmem:[#allocation32_spill] sm:$0xff] }
 0x1c8   : > { %v3872_v36 = vmul.f32 0.5, %v794_v42  ;;  %v3874_v35 = vmul.f32 0.5, %v925_v12  ;;  %v3877_v59 = vmul.f32 %v1229_v27, %v3771_v41  ;;  %v3879_v39 = vmul.f32 0.5, %v796_v14 }
 0x1c9   : > { %2701 = verf.f32 %v1090_v10  ;;  %v1092_v4 = vmul.f32 0.70710677, %v3862_v28  ;;  %v1230_v53 = vadd.f32 1.0, %v2682_v63  ;;  %v3884_v6 = vadd.f32 %v4203_v54, %v3375_v18  ;;  %v4208_v54 = vld [vmem:[#allocation27_spill] sm:$0xff] }
 0x1ca   : > { %2703 = verf.f32 %v1087_v22  ;;  %v1094_v42 = vmul.f32 0.70710677, %v3866_v43  ;;  %v3888_v33 = vmul.f32 %v1228_v30, %v3797_v57  ;;  %v3890_v41 = vmul.f32 0.5, %v927_v46  ;;  %v4206_v46 = vld [vmem:[#allocation34_spill] sm:$0xff] }
 0x1cb   : > { %v2684_v5 = vpop.eup %2683  ;;  %2705 = verf.f32 %v1089_v44  ;;  %v3894_v29 = vadd.f32 %v3704_v32, %v3379_v23  ;;  %v3898_v40 = vadd.f32 %v4204_v31, %v3377_v20  ;;  %v3902_v14 = vadd.f32 %v4205_v0, %v3382_v26  ;;  %v4211_v0 = vld [vmem:[#allocation39_spill] sm:$0xff] }
 0x1cc   : > { %v2686_v11 = vpop.eup %2685  ;;  %v1231_v55 = vadd.f32 1.0, %v2684_v5  ;;  %v1375_v17 = vpack.c.bf16 %v1300_v24, %v3812_v19  ;;  %2707 = verf.f32 %v1092_v4  ;;  %v3907_v25 = vadd.f32 %v4206_v46, %v3375_v18  ;;  %v4207_v19 = vld [vmem:[#allocation35_spill] sm:$0xff] }
 0x1cd   : > { %v2688_v12 = vpop.eup %2687  ;;  %v1233_v1 = vadd.f32 1.0, %v2686_v11  ;;  %v1096_v32 = vmul.f32 0.70710677, %v3894_v29  ;;  %v1091_v52 = vmul.f32 0.70710677, %v3884_v6  ;;  %2709 = verf.f32 %v1094_v42 }
 0x1ce   : > { %v2690_v57 = vpop.eup %2689  ;;  %v1232_v13 = vadd.f32 1.0, %v2688_v12  ;;  %v1098_v16 = vmul.f32 0.70710677, %v3902_v14  ;;  %1718 = vmatprep.mubr.bf16.mxu0 %v1375_v17  ;;  %v1012_v50 = vmul.f32 0.5, %v3828_v58  ;;  %v3915_v24 = vadd.f32 %v4207_v19, %v3377_v20 }
 0x1cf   : > { %2711 = verf.f32 %v1096_v32  ;;  %v1377_v27 = vpack.c.bf16 %v1302_v8, %v3822_v21  ;;  %v2692_v10 = vpop.eup %2691  ;;  %v3919_v22 = vmul.f32 %v1230_v53, %v3802_v15  ;;  %v1234_v45 = vadd.f32 1.0, %v2690_v57 }
 0x1d0   : > { %v1093_v63 = vmul.f32 0.70710677, %v3898_v40  ;;  %2713 = verf.f32 %v1098_v16  ;;  %v1014_v44 = vmul.f32 0.5, %v3842_v51  ;;  %v1095_v58 = vmul.f32 0.70710677, %v3907_v25  ;;  %v4212_v16 = vld [vmem:[#allocation40_spill] sm:$0xff] }
 0x1d1   : > { %v2694_v30 = vpop.eup %2693  ;;  %1830 = vmatprep.mubr.bf16.mxu1 %v1377_v27  ;;  %v1374_v5 = vpack.c.bf16 %v3835_v3, %v3800_v9  ;;  %v1376_v21 = vpack.c.bf16 %v3838_v38, %v3805_v60  ;;  %v3929_v15 = vmul.f32 %v1231_v55, %v3807_v2  ;;  %v3932_v4 = vmul.f32 %v1233_v1, %v3824_v61  ;;  %v4209_v9 = vld [vmem:[#allocation28_spill] sm:$0xff]  ;;  %v4210_v2 = vld [vmem:[#allocation38_spill] sm:$0xff] }
 0x1d2   : > { %v2696_v8 = vpop.eup %2695  ;;  %v1308_v11 = vmul.f32 %v1232_v13, %v3830_v47  ;;  %2715 = verf.f32 %v1091_v52  ;;  %v1097_v53 = vmul.f32 0.70710677, %v3915_v24  ;;  %v3938_v42 = vadd.f32 %v4208_v54, %v3375_v18 }
 0x1d3   : > { %v2698_v51 = vpop.eup %2697  ;;  %1719 = vmatmul.mubr.bf16.gmra.mxu0 %v1374_v5  ;;  %1831 = vmatmul.mubr.bf16.gmra.mxu1 %v1376_v21  ;;  %v3942_v60 = vadd.f32 %v4209_v9, %v3379_v23  ;;  %v3946_v61 = vadd.f32 %v4210_v2, %v3382_v26  ;;  %v1310_v47 = vmul.f32 %v1234_v45, %v3832_v48  ;;  %v3949_v38 = vadd.f32 1.0, %v2692_v10  ;;  %v4213_v10 = vld [vmem:[#allocation37_spill] sm:$0xff] }
 0x1d4   : > { %v2700_v3 = vpop.eup %2699  ;;  %2717 = verf.f32 %v1093_v63  ;;  %v3952_v12 = vmul.f32 0.5, %v3862_v28  ;;  %v1236_v55 = vadd.f32 1.0, %v2696_v8  ;;  %v3957_v17 = vadd.f32 %v4211_v0, %v3375_v18  ;;  %v4214_v63 = vld [vmem:[#allocation29_spill] sm:$0xff] }
 0x1d5   : > { %2719 = verf.f32 %v1095_v58  ;;  %v1100_v31 = vmul.f32 0.70710677, %v3942_v60  ;;  %v3959_v1 = vadd.f32 1.0, %v2694_v30  ;;  %v1238_v46 = vadd.f32 1.0, %v2698_v51 }
 0x1d6   : > { %v2702_v57 = vpop.eup %2701  ;;  %v3962_v48 = vmul.f32 0.5, %v3866_v43  ;;  %v1102_v32 = vmul.f32 0.70710677, %v3946_v61  ;;  %v1240_v28 = vadd.f32 1.0, %v2700_v3  ;;  %2721 = verf.f32 %v1097_v53 }
 0x1d7   : > { %v2704_v13 = vpop.eup %2703  ;;  %v1099_v52 = vmul.f32 0.70710677, %v3938_v42  ;;  %v3968_v19 = vadd.f32 %v4212_v16, %v3377_v20  ;;  %v3972_v45 = vadd.f32 %v4213_v10, %v3377_v20  ;;  %2723 = verf.f32 %v1100_v31 }
 0x1d8   : > { %v2706_v27 = vpop.eup %2705  ;;  %v3976_v43 = vadd.f32 %v3762_v62, %v3379_v23  ;;  %v3980_v30 = vadd.f32 %v4214_v63, %v3382_v26  ;;  %v1312_v58 = vmul.f32 %v1236_v55, %v3872_v36  ;;  %v1242_v5 = vadd.f32 1.0, %v2702_v57 }
 0x1d9   : > { %v1020_v21 = vmul.f32 0.5, %v3894_v29  ;;  %v1103_v8 = vmul.f32 0.70710677, %v3957_v17  ;;  %v2708_v51 = vpop.eup %2707  ;;  %v1314_v53 = vmul.f32 %v1238_v46, %v3874_v35  ;;  %v1239_v54 = vadd.f32 1.0, %v2704_v13 }
 0x1da   : > { %2725 = verf.f32 %v1102_v32  ;;  %v1104_v9 = vmul.f32 0.70710677, %v3976_v43  ;;  %v2710_v62 = vpop.eup %2709  ;;  %v1241_v2 = vadd.f32 1.0, %v2706_v27  ;;  %v1316_v3 = vmul.f32 %v1240_v28, %v1012_v50 }
 0x1db   : > { %2727 = verf.f32 %v1099_v52  ;;  %v1105_v31 = vmul.f32 0.70710677, %v3968_v19  ;;  %v1101_v36 = vmul.f32 0.70710677, %v3972_v45  ;;  %v1106_v29 = vmul.f32 0.70710677, %v3980_v30 }
 0x1dc   : > { %v2712_v0 = vpop.eup %2711  ;;  %2729 = verf.f32 %v1104_v9  ;;  %v1379_v55 = vpack.c.bf16 %v1308_v11, %v3888_v33  ;;  %v1318_v35 = vmul.f32 %v1242_v5, %v1014_v44  ;;  %v1381_v32 = vpack.c.bf16 %v1310_v47, %v3919_v22  ;;  %v4215_v33 = vld [vmem:[#allocation30_spill] sm:$0xff] }
 0x1dd   : > { %v2714_v57 = vpop.eup %2713  ;;  %v1248_v46 = vadd.f32 1.0, %v2712_v0  ;;  %2731 = verf.f32 %v1103_v8  ;;  %v3994_v50 = vadd.f32 %v3775_v56, %v3375_v18  ;;  %v1378_v28 = vpack.c.bf16 %v3929_v15, %v3870_v34  ;;  %v4216_v15 = vld [vmem:[#allocation41_spill] sm:$0xff] }
 0x1de   : > { %v1250_v13 = vadd.f32 1.0, %v2714_v57  ;;  %2733 = verf.f32 %v1106_v29  ;;  %1726 = vmatprep.mubr.bf16.mxu0 %v1379_v55  ;;  %v1244_v16 = vadd.f32 1.0, %v2708_v51  ;;  %1838 = vmatprep.mubr.bf16.mxu1 %v1381_v32  ;;  %v4000_v44 = vadd.f32 %v4215_v33, %v3377_v20 }
 0x1df   : > { %v2716_v52 = vpop.eup %2715  ;;  %2735 = verf.f32 %v1105_v31  ;;  %v1380_v22 = vpack.c.bf16 %v3932_v4, %v3877_v59  ;;  %v1246_v11 = vadd.f32 1.0, %v2710_v62  ;;  %v1022_v47 = vmul.f32 0.5, %v3902_v14  ;;  %1727 = vmatmul.mubr.bf16.gmra.mxu0 %v1378_v28 }
 0x1e0   : > { %2737 = verf.f32 %v1101_v36  ;;  %v4007_v18 = vadd.f32 %v3787_v7, %v3379_v23  ;;  %v1324_v34 = vmul.f32 %v1248_v46, %v1020_v21  ;;  %v4011_v27 = vadd.f32 %v4216_v15, %v3382_v26 }
 0x1e1   : > { %v2718_v56 = vpop.eup %2717  ;;  %1839 = vmatmul.mubr.bf16.gmra.mxu1 %v1380_v22  ;;  %v1383_v20 = vpack.c.bf16 %v1316_v3, %v1312_v58  ;;  %v1385_v10 = vpack.c.bf16 %v1318_v35, %v1314_v53  ;;  %v1315_v59 = vmul.f32 %v1239_v54, %v3879_v39  ;;  %v1326_v4 = vmul.f32 %v1250_v13, %v1022_v47 }
 0x1e2   : > { %v2720_v63 = vpop.eup %2719  ;;  %v1107_v14 = vmul.f32 0.70710677, %v3994_v50  ;;  %v1108_v5 = vmul.f32 0.70710677, %v4007_v18  ;;  %v1317_v23 = vmul.f32 %v1241_v2, %v3890_v41  ;;  %v1320_v7 = vmul.f32 %v1244_v16, %v3952_v12 }
 0x1e3   : > { %v1109_v21 = vmul.f32 0.70710677, %v4000_v44  ;;  %v1110_v8 = vmul.f32 0.70710677, %v4011_v27  ;;  %1734 = vmatprep.mubr.bf16.mxu0 %v1383_v20  ;;  %1846 = vmatprep.mubr.bf16.mxu1 %v1385_v10  ;;  %v2722_v26 = vpop.eup %2721  ;;  %v1311_v58 = vmul.f32 %v3949_v38, %v3853_v49  ;;  %v1322_v39 = vmul.f32 %v1246_v11, %v3962_v48 }
 0x1e4   : > { %2739 = verf.f32 %v1108_v5  ;;  %v2724_v51 = vpop.eup %2723  ;;  %v1313_v53 = vmul.f32 %v3959_v1, %v3855_v37  ;;  %v1247_v41 = vadd.f32 1.0, %v2720_v63  ;;  %v1387_v12 = vpack.c.bf16 %v1324_v34, %v1320_v7 }
 0x1e5   : > { %2741 = verf.f32 %v1110_v8  ;;  %v1019_v54 = vmul.f32 0.5, %v3907_v25  ;;  %v1382_v9 = vpack.c.bf16 %v1315_v59, %v1311_v58  ;;  %v1389_v62 = vpack.c.bf16 %v1326_v4, %v1322_v39 }
 0x1e6   : > { %2743 = verf.f32 %v1107_v14  ;;  %v1243_v3 = vadd.f32 1.0, %v2716_v52  ;;  %v1249_v31 = vadd.f32 1.0, %v2722_v26  ;;  %v1384_v49 = vpack.c.bf16 %v1317_v23, %v1313_v53 }
 0x1e7   : > { %v2726_v2 = vpop.eup %2725  ;;  %2745 = verf.f32 %v1109_v21  ;;  %v1252_v48 = vadd.f32 1.0, %v2724_v51  ;;  %1735 = vmatmul.mubr.bf16.gmra.mxu0 %v1382_v9  ;;  %v1015_v36 = vmul.f32 0.5, %v3884_v6  ;;  %v1245_v37 = vadd.f32 1.0, %v2718_v56 }
 0x1e8   : > { %v2728_v38 = vpop.eup %2727  ;;  %v1323_v1 = vmul.f32 %v1247_v41, %v1019_v54  ;;  %v1021_v29 = vmul.f32 0.5, %v3915_v24  ;;  %1742 = vmatprep.mubr.bf16.mxu0 %v1387_v12  ;;  %v1024_v55 = vmul.f32 0.5, %v3942_v60  ;;  %v1254_v57 = vadd.f32 1.0, %v2726_v2 }
 0x1e9   : > { %v2730_v0 = vpop.eup %2729  ;;  %1847 = vmatmul.mubr.bf16.gmra.mxu1 %v1384_v49  ;;  %v1028_v35 = vmul.f32 0.5, %v3976_v43  ;;  %v1319_v13 = vmul.f32 %v1243_v3, %v1015_v36  ;;  %v1017_v28 = vmul.f32 0.5, %v3898_v40  ;;  %v1026_v6 = vmul.f32 0.5, %v3946_v61 }
 0x1ea   : > { %v2732_v25 = vpop.eup %2731  ;;  %v1256_v46 = vadd.f32 1.0, %v2730_v0  ;;  %1854 = vmatprep.mubr.bf16.mxu1 %v1389_v62  ;;  %v1325_v52 = vmul.f32 %v1249_v31, %v1021_v29  ;;  %v1328_v33 = vmul.f32 %v1252_v48, %v1024_v55  ;;  %v1030_v22 = vmul.f32 0.5, %v3980_v30 }
 0x1eb   : > { %v2734_v32 = vpop.eup %2733  ;;  %v1321_v60 = vmul.f32 %v1245_v37, %v1017_v28  ;;  %v1386_v56 = vpack.c.bf16 %v1323_v1, %v1319_v13  ;;  %v1330_v34 = vmul.f32 %v1254_v57, %v1026_v6  ;;  %v1255_v43 = vadd.f32 1.0, %v2732_v25 }
 0x1ec   : > { %v2736_v16 = vpop.eup %2735  ;;  %v1332_v24 = vmul.f32 %v1256_v46, %v1028_v35  ;;  %v1258_v11 = vadd.f32 1.0, %v2734_v32  ;;  %v1251_v59 = vadd.f32 1.0, %v2728_v38  ;;  %v1027_v40 = vmul.f32 0.5, %v3957_v17 }
 0x1ed   : > { %v2738_v47 = vpop.eup %2737  ;;  %v1257_v10 = vadd.f32 1.0, %v2736_v16  ;;  %v1388_v63 = vpack.c.bf16 %v1325_v52, %v1321_v60  ;;  %v1029_v5 = vmul.f32 0.5, %v3968_v19  ;;  %v1023_v23 = vmul.f32 0.5, %v3938_v42  ;;  %v1340_v52 = vld [vmem:[#allocation2 + $0x38] sm:$0xff] }
 0x1ee   : > { %v1334_v15 = vmul.f32 %v1258_v11, %v1030_v22  ;;  %v1391_v20 = vpack.c.bf16 %v1332_v24, %v1328_v33  ;;  %v1253_v14 = vadd.f32 1.0, %v2738_v47  ;;  %v1331_v7 = vmul.f32 %v1255_v43, %v1027_v40 }
 0x1ef   : > { %1743 = vmatmul.mubr.bf16.gmra.mxu0 %v1386_v56  ;;  %v1032_v21 = vmul.f32 0.5, %v4007_v18  ;;  %v1025_v58 = vmul.f32 0.5, %v3972_v45  ;;  %v1333_v17 = vmul.f32 %v1257_v10, %v1029_v5  ;;  %v1034_v39 = vmul.f32 0.5, %v4011_v27 }
 0x1f0   : > { %v1393_v61 = vpack.c.bf16 %v1334_v15, %v1330_v34  ;;  %1750 = vmatprep.mubr.bf16.mxu0 %v1391_v20  ;;  %v1327_v41 = vmul.f32 %v1251_v59, %v1023_v23  ;;  %v1031_v31 = vmul.f32 0.5, %v3994_v50  ;;  %v1033_v45 = vmul.f32 0.5, %v4000_v44  ;;  %v1339_v50 = vld [vmem:[#allocation2] sm:$0xff]  ;;  %v1341_v34 = vld [vmem:[#allocation2 + $0x50] sm:$0xff] }
 0x1f1   : > { %v2740_v4 = vpop.eup %2739  ;;  %1855 = vmatmul.mubr.bf16.gmra.mxu1 %v1388_v63  ;;  %v1329_v12 = vmul.f32 %v1253_v14, %v1025_v58  ;;  %v1343_v58 = vld [vmem:[#allocation2 + $0x30] sm:$0xff] }
 0x1f2   : > { %v2742_v30 = vpop.eup %2741  ;;  %1862 = vmatprep.mubr.bf16.mxu1 %v1393_v61  ;;  %v1260_v8 = vadd.f32 1.0, %v2740_v4  ;;  %v1390_v9 = vpack.c.bf16 %v1331_v7, %v1327_v41  ;;  %v1342_v61 = vld [vmem:[#allocation2 + $0x18] sm:$0xff] }
 0x1f3   : > { %v2744_v26 = vpop.eup %2743  ;;  %v1262_v51 = vadd.f32 1.0, %v2742_v30  ;;  %v1392_v2 = vpack.c.bf16 %v1333_v17, %v1329_v12 }
 0x1f4   : > { %v2746_v53 = vpop.eup %2745  ;;  %v1336_v19 = vmul.f32 %v1260_v8, %v1032_v21  ;;  %v1259_v42 = vadd.f32 1.0, %v2744_v26 }
 0x1f5   : > { %v1338_v54 = vmul.f32 %v1262_v51, %v1034_v39  ;;  %v1261_v18 = vadd.f32 1.0, %v2746_v53 }
 0x1f6   : > { %v1395_v62 = vpack.c.bf16 %v1336_v19, %v1336_v19  ;;  %v1335_v27 = vmul.f32 %v1259_v42, %v1031_v31 }
 0x1f7   : > { %v1397_v3 = vpack.c.bf16 %v1338_v54, %v1338_v54  ;;  %1751 = vmatmul.mubr.bf16.gmra.mxu0 %v1390_v9  ;;  %v1337_v49 = vmul.f32 %v1261_v18, %v1033_v45  ;;  %v1344_v54 = vld [vmem:[#allocation2 + $0x68] sm:$0xff] }
 0x1f8   : > { %1758 = vmatprep.mubr.bf16.mxu0 %v1395_v62  ;;  %v1394_v38 = vpack.c.bf16 %v1335_v27, %v1335_v27 }
 0x1f9   : > { %1863 = vmatmul.mubr.bf16.gmra.mxu1 %v1392_v2  ;;  %v1396_v48 = vpack.c.bf16 %v1337_v49, %v1337_v49 }
 0x1fa   : > { %1870 = vmatprep.mubr.bf16.mxu1 %v1397_v3 }
 0x1ff   : > { %1759 = vmatmul.mubr.bf16.gmra.mxu0 %v1394_v38  ;;  %v1345_v38 = vld [vmem:[#allocation2 + $0x78] sm:$0xff] }
 0x201   : > { %1871 = vmatmul.mubr.bf16.gmra.mxu1 %v1396_v48 }
 0x25c   : > { %v2317_v36 = vpop.f32.mrf.mxu1 }
 0x25e   : > { %v2318_v29 = vpop.f32.mrf.mxu1 }
 0x25f   : > { %v2319_v25 = vadd.f32 %v2318_v29, %v2317_v36 }
 0x260   : > { %v2320_v57 = vpop.f32.mrf.mxu1 }
 0x262   : > { %v2241_v0 = vpop.f32.mrf.mxu0  ;;  %v2321_v32 = vpop.f32.mrf.mxu1 }
 0x263   : > { %v2322_v28 = vadd.f32 %v2321_v32, %v2320_v57 }
 0x264   : > { %v2242_v37 = vpop.f32.mrf.mxu0 }
 0x265   : > { %v2243_v1 = vadd.f32 %v2242_v37, %v2241_v0 }
 0x266   : > { %v2244_v55 = vpop.f32.mrf.mxu0 }
 0x267   : > { %v1801_v35 = vadd.f32 %v2319_v25, %v2243_v1  ;;  %v1346_v25 = vld [vmem:[#allocation2 + $0x80] sm:$0xff] }
 0x268   : > { %v2245_v44 = vpop.f32.mrf.mxu0 }
 0x269   : > { %v2246_v46 = vadd.f32 %v2245_v44, %v2244_v55  ;;  %v1878_v13 = vadd.f32 %v1801_v35, %v1339_v50 }
 0x26b   : > { %1897 = vst [vmem:[#allocation2] sm:$0xff] %v1878_v13  ;;  %v1804_v6 = vadd.f32 %v2322_v28, %v2246_v46  ;;  %v1347_v28 = vld [vmem:[#allocation2 + $0x8] sm:$0xff] }
 0x26c   : > { %v2247_v33 = vpop.f32.mrf.mxu0  ;;  %v2323_v24 = vpop.f32.mrf.mxu1 }
 0x26d   : > { %v1879_v16 = vadd.f32 %v1804_v6, %v1340_v52 }
 0x26e   : > { %v2248_v22 = vpop.f32.mrf.mxu0  ;;  %v2324_v47 = vpop.f32.mrf.mxu1 }
 0x26f   : > { %1898 = vst [vmem:[#allocation2 + $0x38] sm:$0xff] %v1879_v16  ;;  %v2249_v11 = vadd.f32 %v2248_v22, %v2247_v33  ;;  %v2325_v60 = vadd.f32 %v2324_v47, %v2323_v24 }
 0x270   : > { %v2250_v56 = vpop.f32.mrf.mxu0  ;;  %v2326_v43 = vpop.f32.mrf.mxu1 }
 0x271   : > { %v1809_v15 = vadd.f32 %v2325_v60, %v2249_v11  ;;  %v1348_v60 = vld [vmem:[#allocation2 + $0x88] sm:$0xff] }
 0x272   : > { %v2251_v20 = vpop.f32.mrf.mxu0  ;;  %v2327_v63 = vpop.f32.mrf.mxu1 }
 0x273   : > { %v2252_v10 = vadd.f32 %v2251_v20, %v2250_v56  ;;  %v1880_v59 = vadd.f32 %v1809_v15, %v1341_v34  ;;  %v2328_v40 = vadd.f32 %v2327_v63, %v2326_v43 }
 0x275   : > { %1899 = vst [vmem:[#allocation2 + $0x50] sm:$0xff] %v1880_v59  ;;  %v1812_v4 = vadd.f32 %v2328_v40, %v2252_v10 }
 0x277   : > { %v1881_v14 = vadd.f32 %v1812_v4, %v1342_v61  ;;  %v1349_v61 = vld [vmem:[#allocation2 + $0x28] sm:$0xff] }
 0x279   : > { %v2253_v5 = vpop.f32.mrf.mxu0  ;;  %1900 = vst [vmem:[#allocation2 + $0x18] sm:$0xff] %v1881_v14 }
 0x27a   : > { %v2329_v30 = vpop.f32.mrf.mxu1 }
 0x27b   : > { %v2254_v23 = vpop.f32.mrf.mxu0 }
 0x27c   : > { %v2255_v7 = vadd.f32 %v2254_v23, %v2253_v5  ;;  %v2330_v21 = vpop.f32.mrf.mxu1 }
 0x27d   : > { %v2331_v8 = vadd.f32 %v2330_v21, %v2329_v30  ;;  %v2256_v26 = vpop.f32.mrf.mxu0 }
 0x27e   : > { %v2332_v17 = vpop.f32.mrf.mxu1 }
 0x27f   : > { %v1817_v39 = vadd.f32 %v2331_v8, %v2255_v7  ;;  %v2257_v51 = vpop.f32.mrf.mxu0 }
 0x280   : > { %v2258_v53 = vadd.f32 %v2257_v51, %v2256_v26  ;;  %v2333_v41 = vpop.f32.mrf.mxu1  ;;  %v1350_v26 = vld [vmem:[#allocation2 + $0x40] sm:$0xff] }
 0x281   : > { %v1882_v19 = vadd.f32 %v1817_v39, %v1343_v58  ;;  %v2334_v12 = vadd.f32 %v2333_v41, %v2332_v17 }
 0x283   : > { %1901 = vst [vmem:[#allocation2 + $0x30] sm:$0xff] %v1882_v19  ;;  %v1820_v9 = vadd.f32 %v2334_v12, %v2258_v53 }
 0x285   : > { %v1883_v62 = vadd.f32 %v1820_v9, %v1344_v54  ;;  %v2259_v42 = vpop.f32.mrf.mxu0  ;;  %v1351_v54 = vld [vmem:[#allocation2 + $0x58] sm:$0xff] }
 0x287   : > { %1902 = vst [vmem:[#allocation2 + $0x68] sm:$0xff] %v1883_v62  ;;  %v2260_v2 = vpop.f32.mrf.mxu0  ;;  %v2335_v3 = vpop.f32.mrf.mxu1 }
 0x288   : > { %v2261_v18 = vadd.f32 %v2260_v2, %v2259_v42 }
 0x289   : > { %v2262_v31 = vpop.f32.mrf.mxu0  ;;  %v2336_v45 = vpop.f32.mrf.mxu1 }
 0x28a   : > { %v2337_v27 = vadd.f32 %v2336_v45, %v2335_v3 }
 0x28b   : > { %v2263_v49 = vpop.f32.mrf.mxu0  ;;  %v2338_v48 = vpop.f32.mrf.mxu1 }
 0x28c   : > { %v1825_v0 = vadd.f32 %v2337_v27, %v2261_v18  ;;  %v2264_v36 = vadd.f32 %v2263_v49, %v2262_v31  ;;  %v1352_v27 = vld [vmem:[#allocation2 + $0x10] sm:$0xff] }
 0x28d   : > { %v2339_v37 = vpop.f32.mrf.mxu1 }
 0x28e   : > { %v1884_v1 = vadd.f32 %v1825_v0, %v1345_v38  ;;  %v2340_v29 = vadd.f32 %v2339_v37, %v2338_v48 }
 0x290   : > { %1903 = vst [vmem:[#allocation2 + $0x78] sm:$0xff] %v1884_v1  ;;  %v1828_v55 = vadd.f32 %v2340_v29, %v2264_v36 }
 0x292   : > { %v1885_v50 = vadd.f32 %v1828_v55, %v1346_v25  ;;  %v1353_v25 = vld [vmem:[#allocation2 + $0x20] sm:$0xff] }
 0x293   : > { %v2265_v57 = vpop.f32.mrf.mxu0  ;;  %v2341_v35 = vpop.f32.mrf.mxu1 }
 0x294   : > { %1904 = vst [vmem:[#allocation2 + $0x80] sm:$0xff] %v1885_v50 }
 0x295   : > { %v2266_v44 = vpop.f32.mrf.mxu0  ;;  %v2342_v46 = vpop.f32.mrf.mxu1 }
 0x296   : > { %v2267_v32 = vadd.f32 %v2266_v44, %v2265_v57  ;;  %v2343_v13 = vadd.f32 %v2342_v46, %v2341_v35 }
 0x297   : > { %v2268_v52 = vpop.f32.mrf.mxu0  ;;  %v2344_v6 = vpop.f32.mrf.mxu1 }
 0x298   : > { %v1833_v16 = vadd.f32 %v2343_v13, %v2267_v32 }
 0x299   : > { %v2269_v33 = vpop.f32.mrf.mxu0  ;;  %v2345_v24 = vpop.f32.mrf.mxu1 }
 0x29a   : > { %v1886_v22 = vadd.f32 %v1833_v16, %v1347_v28  ;;  %v2270_v11 = vadd.f32 %v2269_v33, %v2268_v52  ;;  %v2346_v47 = vadd.f32 %v2345_v24, %v2344_v6  ;;  %v1354_v28 = vld [vmem:[#allocation2 + $0x70] sm:$0xff] }
 0x29c   : > { %1905 = vst [vmem:[#allocation2 + $0x8] sm:$0xff] %v1886_v22  ;;  %v1836_v56 = vadd.f32 %v2346_v47, %v2270_v11 }
 0x29e   : > { %v1887_v34 = vadd.f32 %v1836_v56, %v1348_v60  ;;  %v1355_v60 = vld [vmem:[#allocation2 + $0x60] sm:$0xff] }
 0x29f   : > { %v2271_v43 = vpop.f32.mrf.mxu0 }
 0x2a0   : > { %1906 = vst [vmem:[#allocation2 + $0x88] sm:$0xff] %v1887_v34 }
 0x2a1   : > { %v2347_v15 = vpop.f32.mrf.mxu1  ;;  %v2272_v20 = vpop.f32.mrf.mxu0 }
 0x2a2   : > { %v2273_v10 = vadd.f32 %v2272_v20, %v2271_v43 }
 0x2a3   : > { %v2348_v63 = vpop.f32.mrf.mxu1  ;;  %v2274_v40 = vpop.f32.mrf.mxu0 }
 0x2a4   : > { %v2349_v59 = vadd.f32 %v2348_v63, %v2347_v15 }
 0x2a5   : > { %v2350_v4 = vpop.f32.mrf.mxu1  ;;  %v2275_v5 = vpop.f32.mrf.mxu0 }
 0x2a6   : > { %v1841_v14 = vadd.f32 %v2349_v59, %v2273_v10  ;;  %v2276_v30 = vadd.f32 %v2275_v5, %v2274_v40  ;;  %v1356_v40 = vld [vmem:[#allocation2 + $0x90] sm:$0xff] }
 0x2a7   : > { %v2351_v23 = vpop.f32.mrf.mxu1  ;;  %v2277_v8 = vpop.f32.mrf.mxu0 }
 0x2a8   : > { %v1888_v7 = vadd.f32 %v1841_v14, %v1349_v61  ;;  %v2352_v21 = vadd.f32 %v2351_v23, %v2350_v4 }
 0x2a9   : > { %v2353_v58 = vpop.f32.mrf.mxu1  ;;  %v2278_v39 = vpop.f32.mrf.mxu0 }
 0x2aa   : > { %1907 = vst [vmem:[#allocation2 + $0x28] sm:$0xff] %v1888_v7  ;;  %v1844_v17 = vadd.f32 %v2352_v21, %v2276_v30  ;;  %v2279_v51 = vadd.f32 %v2278_v39, %v2277_v8  ;;  %v1357_v8 = vld [vmem:[#allocation2 + $0x48] sm:$0xff] }
 0x2ab   : > { %v2354_v53 = vpop.f32.mrf.mxu1  ;;  %v2280_v12 = vpop.f32.mrf.mxu0 }
 0x2ac   : > { %v1889_v41 = vadd.f32 %v1844_v17, %v1350_v26  ;;  %v2355_v19 = vadd.f32 %v2354_v53, %v2353_v58 }
 0x2ad   : > { %v2356_v9 = vpop.f32.mrf.mxu1  ;;  %v2281_v42 = vpop.f32.mrf.mxu0 }
 0x2ae   : > { %1908 = vst [vmem:[#allocation2 + $0x40] sm:$0xff] %v1889_v41  ;;  %v1849_v62 = vadd.f32 %v2355_v19, %v2279_v51  ;;  %v2282_v2 = vadd.f32 %v2281_v42, %v2280_v12 }
 0x2af   : > { %v2357_v3 = vpop.f32.mrf.mxu1  ;;  %v2283_v45 = vpop.f32.mrf.mxu0 }
 0x2b0   : > { %v1890_v18 = vadd.f32 %v1849_v62, %v1351_v54  ;;  %v2358_v31 = vadd.f32 %v2357_v3, %v2356_v9 }
 0x2b1   : > { %v2359_v49 = vpop.f32.mrf.mxu1  ;;  %v2284_v48 = vpop.f32.mrf.mxu0 }
 0x2b2   : > { %1909 = vst [vmem:[#allocation2 + $0x58] sm:$0xff] %v1890_v18  ;;  %v1852_v38 = vadd.f32 %v2358_v31, %v2282_v2  ;;  %v2285_v0 = vadd.f32 %v2284_v48, %v2283_v45 }
 0x2b3   : > { %v2360_v36 = vpop.f32.mrf.mxu1  ;;  %v2286_v29 = vpop.f32.mrf.mxu0 }
 0x2b4   : > { %v1891_v37 = vadd.f32 %v1852_v38, %v1352_v27  ;;  %v2361_v1 = vadd.f32 %v2360_v36, %v2359_v49 }
 0x2b5   : > { %v2362_v55 = vpop.f32.mrf.mxu1  ;;  %v2287_v57 = vpop.f32.mrf.mxu0 }
 0x2b6   : > { %1910 = vst [vmem:[#allocation2 + $0x10] sm:$0xff] %v1891_v37  ;;  %v1857_v50 = vadd.f32 %v2361_v1, %v2285_v0  ;;  %v2288_v35 = vadd.f32 %v2287_v57, %v2286_v29 }
 0x2b7   : > { %v2363_v44 = vpop.f32.mrf.mxu1  ;;  %v2289_v13 = vpop.f32.mrf.mxu0 }
 0x2b8   : > { %v1892_v46 = vadd.f32 %v1857_v50, %v1353_v25  ;;  %v2364_v32 = vadd.f32 %v2363_v44, %v2362_v55 }
 0x2b9   : > { %v2365_v52 = vpop.f32.mrf.mxu1  ;;  %v2290_v16 = vpop.f32.mrf.mxu0 }
 0x2ba   : > { %1911 = vst [vmem:[#allocation2 + $0x20] sm:$0xff] %v1892_v46  ;;  %v1860_v6 = vadd.f32 %v2364_v32, %v2288_v35  ;;  %v2291_v33 = vadd.f32 %v2290_v16, %v2289_v13 }
 0x2bb   : > { %v2366_v24 = vpop.f32.mrf.mxu1  ;;  %v2292_v47 = vpop.f32.mrf.mxu0 }
 0x2bc   : > { %v1893_v22 = vadd.f32 %v1860_v6, %v1354_v28  ;;  %v2367_v11 = vadd.f32 %v2366_v24, %v2365_v52 }
 0x2bd   : > { %v2368_v56 = vpop.f32.mrf.mxu1  ;;  %v2293_v43 = vpop.f32.mrf.mxu0 }
 0x2be   : > { %1912 = vst [vmem:[#allocation2 + $0x70] sm:$0xff] %v1893_v22  ;;  %v1865_v34 = vadd.f32 %v2367_v11, %v2291_v33  ;;  %v2294_v15 = vadd.f32 %v2293_v43, %v2292_v47 }
 0x2bf   : > { %v2369_v20 = vpop.f32.mrf.mxu1  ;;  %v2295_v59 = vpop.f32.mrf.mxu0 }
 0x2c0   : > { %v1894_v10 = vadd.f32 %v1865_v34, %v1355_v60  ;;  %v2370_v63 = vadd.f32 %v2369_v20, %v2368_v56 }
 0x2c1   : > { %v2371_v61 = vpop.f32.mrf.mxu1  ;;  %v2296_v14 = vpop.f32.mrf.mxu0 }
 0x2c2   : > { %1913 = vst [vmem:[#allocation2 + $0x60] sm:$0xff] %v1894_v10  ;;  %v1868_v4 = vadd.f32 %v2370_v63, %v2294_v15  ;;  %v2297_v5 = vadd.f32 %v2296_v14, %v2295_v59 }
 0x2c3   : > { %v2372_v30 = vpop.f32.mrf.mxu1  ;;  %v2298_v21 = vpop.f32.mrf.mxu0 }
 0x2c4   : > { %v1895_v23 = vadd.f32 %v1868_v4, %v1356_v40  ;;  %v2373_v7 = vadd.f32 %v2372_v30, %v2371_v61 }
 0x2c5   : > { %v2374_v26 = vpop.f32.mrf.mxu1  ;;  %v2299_v17 = vpop.f32.mrf.mxu0 }
 0x2c6   : > { %1914 = vst [vmem:[#allocation2 + $0x90] sm:$0xff] %v1895_v23  ;;  %v1873_v58 = vadd.f32 %v2373_v7, %v2297_v5  ;;  %1919 = sbr.rel (%p2216_p8) target bundleno = 726 (0x2d6), region = 64 }
 0x2c7   : > { %v2375_v39 = vpop.f32.mrf.mxu1 }
 0x2c8   : > { %v1896_v51 = vadd.f32 %v1873_v58, %v1357_v8 }
 0x2ca   : > { %1915 = vst [vmem:[#allocation2 + $0x48] sm:$0xff] %v1896_v51 }
 0x2cb   : > { %v1920_v53 = vld [vmem:[#allocation2] sm:$0xff]  ;;  %v1921_v41 = vld [vmem:[#allocation2 + $0x38] sm:$0xff]  ;;  %v1922_v19 = vld [vmem:[#allocation2 + $0x50] sm:$0xff] }
 0x2cc   : > { %1939 = vst [vmem:[%s3274_s9] sm:$0xff] %v1920_v53  ;;  %1940 = vst [vmem:[%s3274_s9 + $0x8] sm:$0xff] %v1921_v41  ;;  %v1923_v12 = vld [vmem:[#allocation2 + $0x18] sm:$0xff]  ;;  %v1924_v54 = vld [vmem:[#allocation2 + $0x30] sm:$0xff] }
 0x2cd   : > { %1941 = vst [vmem:[%s3274_s9 + $0x10] sm:$0xff] %v1922_v19  ;;  %v1925_v9 = vld [vmem:[#allocation2 + $0x68] sm:$0xff]  ;;  %1942 = vst [vmem:[%s3274_s9 + $0x18] sm:$0xff] %v1923_v12  ;;  %v1926_v62 = vld [vmem:[#allocation2 + $0x78] sm:$0xff] }
 0x2ce   : > { %1943 = vst [vmem:[%s3274_s9 + $0x20] sm:$0xff] %v1924_v54  ;;  %1944 = vst [vmem:[%s3274_s9 + $0x28] sm:$0xff] %v1925_v9  ;;  %v1927_v42 = vld [vmem:[#allocation2 + $0x80] sm:$0xff]  ;;  %v1928_v2 = vld [vmem:[#allocation2 + $0x8] sm:$0xff] }
 0x2cf   : > { %1945 = vst [vmem:[%s3274_s9 + $0x30] sm:$0xff] %v1926_v62  ;;  %1946 = vst [vmem:[%s3274_s9 + $0x38] sm:$0xff] %v1927_v42  ;;  %v1929_v3 = vld [vmem:[#allocation2 + $0x88] sm:$0xff]  ;;  %v1931_v31 = vld [vmem:[#allocation2 + $0x40] sm:$0xff] }
 0x2d0   : > { %1947 = vst [vmem:[%s3274_s9 + $0x40] sm:$0xff] %v1928_v2  ;;  %v1930_v18 = vld [vmem:[#allocation2 + $0x28] sm:$0xff]  ;;  %1948 = vst [vmem:[%s3274_s9 + $0x48] sm:$0xff] %v1929_v3  ;;  %v1932_v45 = vld [vmem:[#allocation2 + $0x58] sm:$0xff] }
 0x2d1   : > { %1949 = vst [vmem:[%s3274_s9 + $0x50] sm:$0xff] %v1930_v18  ;;  %1950 = vst [vmem:[%s3274_s9 + $0x58] sm:$0xff] %v1931_v31  ;;  %v1933_v27 = vld [vmem:[#allocation2 + $0x10] sm:$0xff]  ;;  %v1934_v49 = vld [vmem:[#allocation2 + $0x20] sm:$0xff] }
 0x2d2   : > { %1951 = vst [vmem:[%s3274_s9 + $0x60] sm:$0xff] %v1932_v45  ;;  %1952 = vst [vmem:[%s3274_s9 + $0x68] sm:$0xff] %v1933_v27  ;;  %v1935_v38 = vld [vmem:[#allocation2 + $0x70] sm:$0xff]  ;;  %v1936_v48 = vld [vmem:[#allocation2 + $0x60] sm:$0xff] }
 0x2d3   : > { %1953 = vst [vmem:[%s3274_s9 + $0x70] sm:$0xff] %v1934_v49  ;;  %v1937_v0 = vld [vmem:[#allocation2 + $0x90] sm:$0xff]  ;;  %1954 = vst [vmem:[%s3274_s9 + $0x78] sm:$0xff] %v1935_v38  ;;  %v1938_v36 = vld [vmem:[#allocation2 + $0x48] sm:$0xff] }
 0x2d4   : > { %1955 = vst [vmem:[%s3274_s9 + $0x80] sm:$0xff] %v1936_v48  ;;  %1956 = vst [vmem:[%s3274_s9 + $0x88] sm:$0xff] %v1937_v0 }
 0x2d5   : > { %1957 = vst [vmem:[%s3274_s9 + $0x90] sm:$0xff] %v1938_v36 }
 0x2d6 PF: > { %s4217_s5 = sld [smem:[#allocation19_spill]]  ;;  %s1972_s0 = sshll.u32 %s3274_s9, 4  ;;  %s4068_s0 = int_to_ptr.vmem [resolvable:$true] %s1972_s0 }
 0x2d7   : > { %s4218_s13 = sld [smem:[#allocation44_spill]]  ;;  %s1959_s11 = scalar_lea.sflag [#allocation5], %s3247_s6 }
 0x2d8   : > { %s2859_s28 = scalar_lea.vmem %s4068_s0, 2432  ;;  %s2999_s1 = smov [#allocation11]  }
 0x2d9   : > { %p2860_p1 = scmp.ne.s32.totalorder %s4068_s0, %s2859_s28  ;;  %s2863_s14 = sshll.u32 %s2999_s1, 4  ;;  %s2864_s14 = int_to_ptr.vmem [resolvable:$false] %s2863_s14 }
 0x2da   : > { %s2865_s16 = scalar_lea.vmem %s2864_s14, 4864  ;;  %p2866_p2 = scmp.lt.s32.totalorder %s4068_s0, %s2864_s14 }
 0x2db   : > { %p2861_p0 = pnand %p2860_p1, %p3188_p13  ;;  %p2867_p4 = scmp.lt.s32.totalorder %s2865_s16, %s2859_s28 }
 0x2dc   : > { %s2224_s24 = smul.u32 2432, %s4217_s5 }
 0x2dd   : > { %p2862_p9 = pneg %p2861_p0  ;;  %p2868_p3 = por %p2867_p4, %p2866_p2 }
 0x2de   : > { %s4066_s15 = scalar_lea.hbm %s4218_s13, %s2224_s24 }
 0x2df   : > { %p2869_p7 = pnand %p2868_p3, %p2862_p9 }
 0x2e1   : > { %2872 = shalt.err (!%p2869_p7)
}
 0x2e2   : > { %s2873_s7 = scalar_lea.hbm %s4066_s15, 2432  ;;  %s2877_s21 = scalar_lea.hbm %s4218_s13, 4864 }
 0x2e3   : > { %p2874_p10 = scmp.ne.s32.totalorder %s4066_s15, %s2873_s7  ;;  %p2878_p6 = scmp.lt.s32.totalorder %s4066_s15, %s4218_s13 }
 0x2e4   : > { %p2879_p5 = scmp.lt.s32.totalorder %s2877_s21, %s2873_s7 }
 0x2e5   : > { %p2875_p11 = pnand %p2874_p10, %p3188_p13 }
 0x2e6   : > { %p2880_p8 = por %p2879_p5, %p2878_p6 }
 0x2e7   : > { %p2876_p12 = pneg %p2875_p11 }
 0x2e9   : > { %p2881_p1 = pnand %p2880_p8, %p2876_p12 }
 0x2eb   : > { %2884 = shalt.err (!%p2881_p1)
}
 0x2ec   : > { %s3000_s12 = smov 128   ;;  %s3001_s17 = smov 8  }
 0x2ed   : > { %2388 = dma.vmem_to_hbm [thread:$0]  (%p3188_p13), %s4068_s0, 2432, %s4066_s15, %s1959_s11, %s3000_s12, %s3000_s12, %s3001_s17  }
 0x2ee PF: > { %s4219_s9 = sld [smem:[#allocation21_spill]] }
 0x2ef   : > { %s4220_s18 = sld [smem:[#allocation17_spill]] }
 0x2f0   : > { %s4221_s8 = sld [smem:[#allocation26_spill]] }
 0x2f4   : > { %p2408_p0 = scmp.ge.s32.totalorder %s4219_s9, 2 }
 0x2f5   : > { %s1987_s5 = sand.u32 1, %s4220_s18  }
 0x2f6   : > { %p4222_p9 = scmp.ne.s32.totalorder %s4221_s8, 0  ;;  %s1988_s24 = scalar_lea.sflag [#allocation5], %s1987_s5 }
 0x2f8   : > { %p2404_p2 = pnand %p2408_p0, %p4222_p9 }
 0x2fa   : > { %p2405_p4 = pneg %p2404_p2 }
 0x2fc   : > { %2942 = dma.done.wait (%p2405_p4), %s1988_s24, 2432  }
 0x2fd   : > { %2944 = vsyncadd (%p2405_p4), %s1988_s24, 4294964864  ;;  %s27_s28 = sadd.s32 1, %s4219_s9   ;;  %s4223_s27 = sld [smem:[#allocation16_spill]] }
 0x2fe   : > { %p24_p3 = scmp.ge.s32.totalorder %s27_s28, 6   ;;  %s4224_s20 = sld [smem:[#allocation24_spill]] }
 0x2ff   : > { %s4225_s10 = sld [smem:[#allocation18_spill]]  ;;  %s4230_s18 = smov %s2951_s19 }
 0x300   : > { %s4226_s23 = sld [smem:[#allocation25_spill]]  ;;  %s4232_s21 = smov %s2963_s22 }
 0x301   : > { %s4227_s25 = sld [smem:[#allocation20_spill]]  ;;  %s4234_s24 = smov %s2979_s26 }
 0x302   : > { %s4228_s6 = sld [smem:[#allocation22_spill]] }
 0x303   : > { %s4229_s0 = sld [smem:[#allocation23_spill]]  ;;  %s4231_s19 = smov %s4223_s27 }
 0x305   : > { %s4233_s22 = smov %s4225_s10  ;;  %26 = sbr.rel (!%p24_p3) target bundleno = 17 (0x11), region = 130 }
 0x308   : > { %s4235_s26 = smov %s4228_s6 }
 0x309   : > { %s4236_s27 = smov %s4229_s0 }
 0x30a   :  { %1993 = vsyncpa [#allocation4], 1 }
 0x30b   :  { %1995 = vsyncpa [#allocation4 + $0x1], 1 }
 0x30c   :  { %1996 = vsyncpa [#allocation7], 1 }
 0x30d   :  { %1998 = vsyncpa [#allocation7 + $0x1], 1 }
 0x30e   :  { %1999 = vsyncpa [#allocation10], 1 }
 0x30f   :  { %2001 = vsyncpa [#allocation10 + $0x1], 1 }
 0x310   :  { %2002 = vsyncpa [#allocation5], 1 }
 0x311   :  { %2004 = vsyncpa [#allocation5 + $0x1], 1 }

</bundles_post_ra>
